<compile_context>
chip_gen: v7x
topology: tpu7x:2x2x1
jax: 0.10.0
libtpu: 0.0.40
codegen_flags: <defaults>
</compile_context>

<pallas_src>
import functools
import math

import jax
import jax.numpy as jnp
from jax.experimental import pallas as pl
from jax.experimental.pallas import tpu as pltpu


def _layer_norm(z, g, b, eps=1e-5):
    mu = jnp.mean(z, axis=-1, keepdims=True)
    var = jnp.mean(jnp.square(z - mu), axis=-1, keepdims=True)
    return (z - mu) * jax.lax.rsqrt(var + eps) * g + b


# ----------------------------------------------------------------------------
# Fused kernel: one grid step processes a chunk of BC batches.
# ----------------------------------------------------------------------------
def _fft_block_kernel(x_ref, maskadd_ref, keep_ref, gam_ref, bet_ref,
                      wq_ref, wk_ref, wv_ref, bq_ref, bk_ref, bv_ref,
                      wo_ref, bo_ref, ln1g_ref, ln1b_ref,
                      w1_ref, b1_ref, w2_ref, b2_ref, ln2g_ref, ln2b_ref,
                      o_ref, *, num_heads, kernel_size):
    x3 = x_ref[...]                                    # (BC, L, D)
    BC, L, D = x3.shape
    H = num_heads
    hd = D // H
    N = BC * L
    scale = 1.0 / math.sqrt(hd)

    # ---------------- multi-head self-attention (heads batched) -------------
    # x broadcast over heads -> (BC*H, L, D); weights are per-head slabs.
    xh = jnp.broadcast_to(x3[:, None], (BC, H, L, D)).reshape(BC * H, L, D)
    q = jnp.einsum('nld,nde->nle', xh, wq_ref[...],
                   preferred_element_type=jnp.float32) + bq_ref[...]
    k = jnp.einsum('nld,nde->nle', xh, wk_ref[...],
                   preferred_element_type=jnp.float32) + bk_ref[...]
    v = jnp.einsum('nld,nde->nle', xh, wv_ref[...],
                   preferred_element_type=jnp.float32) + bv_ref[...]

    s = jnp.einsum('nqd,nkd->nqk', q, k,
                   preferred_element_type=jnp.float32) * scale   # (BC*H, L, L)
    s = s + maskadd_ref[...]                           # key_padding_mask (-1e30)
    s = s - jnp.max(s, axis=-1, keepdims=True)
    p = jnp.exp(s)
    p = p * pl.reciprocal(jnp.sum(p, axis=-1, keepdims=True), approx=True)
    ctx = jnp.einsum('nqk,nkd->nqd', p, v,
                     preferred_element_type=jnp.float32)         # (BC*H, L, hd)

    # per-head output projection, summed over heads (avoids a head-merge
    # transpose / lane concat of the activations)
    projh = jnp.einsum('nld,nde->nle', ctx, wo_ref[...],
                       preferred_element_type=jnp.float32)       # (BC*H, L, D)
    proj4 = projh.reshape(BC, H, L, D)
    proj = proj4[:, 0]
    for h in range(1, H):
        proj = proj + proj4[:, h]

    # out_proj bias + residual + LayerNorm + masked_fill  (flattened (N, D))
    yf = (proj + x3).reshape(N, D) + bo_ref[...]
    yf = _layer_norm(yf, ln1g_ref[...], ln1b_ref[...])
    keep3 = keep_ref[...]                              # (BC, L, 1), 1.0 = valid
    yf = yf * keep3.reshape(N, 1)

    # ---------------- position-wise conv FF (im2col -> one matmul each) -----
    K = kernel_size
    pad = (K - 1) // 2
    l_idx = jax.lax.broadcasted_iota(jnp.int32, (N, 1), 0) % L

    def shifted(a, delta):
        # row r of result = a[r + delta] if (r % L) + delta is inside [0, L),
        # else 0  ('same' zero padding; also blocks leakage across batches).
        if delta == 0:
            return a
        z = jnp.zeros((abs(delta), a.shape[1]), a.dtype)
        if delta > 0:
            sh = jnp.concatenate([a[delta:], z], axis=0)
        else:
            sh = jnp.concatenate([z, a[:a.shape[0] + delta]], axis=0)
        valid = jnp.logical_and(l_idx + delta >= 0, l_idx + delta < L)
        return jnp.where(valid, sh, jnp.zeros_like(sh))

    cols1 = jnp.concatenate([shifted(yf, t - pad) for t in range(K)], axis=-1)
    h1 = jnp.dot(cols1, w1_ref[...],
                 preferred_element_type=jnp.float32) + b1_ref[...]
    h1 = jnp.maximum(h1, 0.0)                          # ReLU
    cols2 = jnp.concatenate([shifted(h1, t - pad) for t in range(K)], axis=-1)
    conv = jnp.dot(cols2, w2_ref[...],
                   preferred_element_type=jnp.float32) + b2_ref[...]

    # residual + LayerNorm + FiLM + final masked_fill
    y2 = _layer_norm(conv + yf, ln2g_ref[...], ln2b_ref[...]).reshape(BC, L, D)
    y2 = gam_ref[...] * y2 + bet_ref[...]
    y2 = y2 * keep3
    o_ref[...] = y2


# ----------------------------------------------------------------------------
# Host-side weight preparation (PyTorch layouts -> kernel-ready layouts)
# ----------------------------------------------------------------------------
def prepare_params(raw, *, num_heads, kernel_size, batch_chunk):
    D = raw["out_proj_w"].shape[0]
    H = num_heads
    hd = D // H
    K = kernel_size
    BC = batch_chunk

    def per_head_in(w_slice):            # (D_out, D_in) -> (BC*H, D_in, hd)
        wh = w_slice.reshape(H, hd, D).transpose(0, 2, 1)
        return jnp.tile(wh, (BC, 1, 1))

    def per_head_bias(b_slice):          # (D,) -> (BC*H, 1, hd)
        return jnp.tile(b_slice.reshape(H, 1, hd), (BC, 1, 1))

    in_w, in_b = raw["in_proj_w"], raw["in_proj_b"]
    wo = raw["out_proj_w"]               # (D_out, D_in)
    wo_h = jnp.tile(wo.T.reshape(H, hd, D), (BC, 1, 1))        # (BC*H, hd, D)

    w1, w2 = raw["conv1_w"], raw["conv2_w"]      # (C, D, K), (D, C, K)
    C = w1.shape[0]
    w1_col = jnp.transpose(w1, (2, 1, 0)).reshape(K * D, C)    # im2col weight
    w2_col = jnp.transpose(w2, (2, 1, 0)).reshape(K * C, D)

    return dict(
        wq=per_head_in(in_w[:D]), wk=per_head_in(in_w[D:2 * D]),
        wv=per_head_in(in_w[2 * D:]),
        bq=per_head_bias(in_b[:D]), bk=per_head_bias(in_b[D:2 * D]),
        bv=per_head_bias(in_b[2 * D:]),
        wo=wo_h, bo=raw["out_proj_b"].reshape(1, D),
        ln1_g=raw["ln1_g"].reshape(1, D), ln1_b=raw["ln1_b"].reshape(1, D),
        w1=w1_col, b1=raw["conv1_b"].reshape(1, C),
        w2=w2_col, b2=raw["conv2_b"].reshape(1, D),
        ln2_g=raw["ln2_g"].reshape(1, D), ln2_b=raw["ln2_b"].reshape(1, D),
    )


# ----------------------------------------------------------------------------
# Wrapper
# ----------------------------------------------------------------------------
def fft_block_forward(x, film_params, mask, raw_params, *, num_heads,
                      kernel_size, batch_chunk=None):
    """x: (B, L, D) f32, film_params: (B, 2D) f32, mask: (B, L) bool (True = pad)."""
    B, L, D = x.shape
    H = num_heads
    if batch_chunk is None:
        # >= 2 grid steps when possible so the "parallel" batch axis can use
        # both v7x TensorCores; each step still folds BC batches into M.
        batch_chunk = B // 2 if (B % 2 == 0 and B >= 2) else B
    BC = batch_chunk
    assert B % BC == 0, "batch must be divisible by batch_chunk"
    G = B // BC
    K = kernel_size
    hd = D // H

    params = prepare_params(raw_params, num_heads=H, kernel_size=K,
                            batch_chunk=BC)
    C = params["b1"].shape[1]

    mask_f = mask.astype(jnp.float32)
    keep = (1.0 - mask_f).reshape(B, L, 1)                       # 1.0 = valid
    maskadd = jnp.broadcast_to((mask_f * (-1e30))[:, None, None, :],
                               (B, H, 1, L)).reshape(B * H, 1, L)
    gam = film_params[:, :D].reshape(B, 1, D)
    bet = film_params[:, D:].reshape(B, 1, D)

    def rep(shape):                       # replicated (same block every step)
        return pl.BlockSpec(shape, lambda i: (0,) * len(shape))

    per_chunk = lambda i: (i, 0, 0)

    in_specs = [
        pl.BlockSpec((BC, L, D), per_chunk),         # x
        pl.BlockSpec((BC * H, 1, L), per_chunk),     # additive key-pad mask
        pl.BlockSpec((BC, L, 1), per_chunk),         # keep mask
        pl.BlockSpec((BC, 1, D), per_chunk),         # FiLM gamma
        pl.BlockSpec((BC, 1, D), per_chunk),         # FiLM beta
        rep((BC * H, D, hd)),                        # wq
        rep((BC * H, D, hd)),                        # wk
        rep((BC * H, D, hd)),                        # wv
        rep((BC * H, 1, hd)),                        # bq
        rep((BC * H, 1, hd)),                        # bk
        rep((BC * H, 1, hd)),                        # bv
        rep((BC * H, hd, D)),                        # wo (per-head)
        rep((1, D)),                                 # bo
        rep((1, D)), rep((1, D)),                    # ln1 gamma/beta
        rep((K * D, C)), rep((1, C)),                # conv1 (im2col), bias
        rep((K * C, D)), rep((1, D)),                # conv2 (im2col), bias
        rep((1, D)), rep((1, D)),                    # ln2 gamma/beta
    ]

    kernel = functools.partial(_fft_block_kernel, num_heads=H, kernel_size=K)
    return pl.pallas_call(
        kernel,
        out_shape=jax.ShapeDtypeStruct((B, L, D), jnp.float32),
        grid=(G,),
        in_specs=in_specs,
        out_specs=pl.BlockSpec((BC, L, D), per_chunk),
        compiler_params=pltpu.CompilerParams(
            dimension_semantics=("parallel",),
            vmem_limit_bytes=32 * 1024 * 1024),
    )(x, maskadd, keep, gam, bet,
      params["wq"], params["wk"], params["wv"],
      params["bq"], params["bk"], params["bv"],
      params["wo"], params["bo"], params["ln1_g"], params["ln1_b"],
      params["w1"], params["b1"], params["w2"], params["b2"],
      params["ln2_g"], params["ln2_b"])


def init_raw_params(key, D, C, K):
    """Parameters in their native PyTorch layouts."""
    ks = jax.random.split(key, 8)
    s = 0.05
    return dict(
        in_proj_w=jax.random.normal(ks[0], (3 * D, D), jnp.float32) * s,
        in_proj_b=jax.random.normal(ks[1], (3 * D,), jnp.float32) * s,
        out_proj_w=jax.random.normal(ks[2], (D, D), jnp.float32) * s,
        out_proj_b=jax.random.normal(ks[3], (D,), jnp.float32) * s,
        conv1_w=jax.random.normal(ks[4], (C, D, K), jnp.float32) * s,
        conv1_b=jax.random.normal(ks[5], (C,), jnp.float32) * s,
        conv2_w=jax.random.normal(ks[6], (D, C, K), jnp.float32) * s,
        conv2_b=jax.random.normal(ks[7], (D,), jnp.float32) * s,
        ln1_g=jnp.ones((D,), jnp.float32), ln1_b=jnp.zeros((D,), jnp.float32),
        ln2_g=jnp.ones((D,), jnp.float32), ln2_b=jnp.zeros((D,), jnp.float32),
    )


if __name__ == "__main__":
    # hparams: hidden_embed_dim=32, attn_nb_heads=4, conv_channels=64, conv_kernel=3
    B, L, D, H, C, K = 2, 8, 32, 4, 64, 3

    key = jax.random.PRNGKey(0)
    kx, kf, kp = jax.random.split(key, 3)
    x = jax.random.normal(kx, (B, L, D), jnp.float32)
    film_params = jax.random.normal(kf, (B, 2 * D), jnp.float32)
    # key_padding_mask: True = padded position (last 2 steps of batch 0 padded)
    mask = jnp.zeros((B, L), jnp.bool_).at[0, L - 2:].set(True)

    raw = init_raw_params(kp, D, C, K)

    out = fft_block_forward(x, film_params, mask, raw,
                            num_heads=H, kernel_size=K)
    jax.block_until_ready(out)
    assert out.shape == (B, L, D)
    print("KERNEL_OK")
</pallas_src>

<mosaic_0001>
module attributes {stable_mosaic.version = 11 : i64} {
  func.func @_fft_block_kernel(%arg0: i32, %arg1: memref<1x8x32xf32, #tpu.memory_space<vmem>>, %arg2: memref<4x1x8xf32, #tpu.memory_space<vmem>>, %arg3: memref<1x8x1xf32, #tpu.memory_space<vmem>>, %arg4: memref<1x1x32xf32, #tpu.memory_space<vmem>>, %arg5: memref<1x1x32xf32, #tpu.memory_space<vmem>>, %arg6: memref<4x32x8xf32, #tpu.memory_space<vmem>>, %arg7: memref<4x32x8xf32, #tpu.memory_space<vmem>>, %arg8: memref<4x32x8xf32, #tpu.memory_space<vmem>>, %arg9: memref<4x1x8xf32, #tpu.memory_space<vmem>>, %arg10: memref<4x1x8xf32, #tpu.memory_space<vmem>>, %arg11: memref<4x1x8xf32, #tpu.memory_space<vmem>>, %arg12: memref<4x8x32xf32, #tpu.memory_space<vmem>>, %arg13: memref<1x32xf32, #tpu.memory_space<vmem>>, %arg14: memref<1x32xf32, #tpu.memory_space<vmem>>, %arg15: memref<1x32xf32, #tpu.memory_space<vmem>>, %arg16: memref<96x64xf32, #tpu.memory_space<vmem>>, %arg17: memref<1x64xf32, #tpu.memory_space<vmem>>, %arg18: memref<192x32xf32, #tpu.memory_space<vmem>>, %arg19: memref<1x32xf32, #tpu.memory_space<vmem>>, %arg20: memref<1x32xf32, #tpu.memory_space<vmem>>, %arg21: memref<1x32xf32, #tpu.memory_space<vmem>>, %arg22: memref<1x8x32xf32, #tpu.memory_space<vmem>>) attributes {dimension_semantics = [#tpu.dimension_semantics<parallel>], iteration_bounds = array<i64: 2>, scalar_prefetch = 0 : i64, scratch_operands = 0 : i64, tpu.core_type = #tpu.core_type<tc>, window_params = [{transform_indices = @transform_0, window_bounds = array<i64: 1, 8, 32>}, {transform_indices = @transform_1, window_bounds = array<i64: 4, 1, 8>}, {transform_indices = @transform_2, window_bounds = array<i64: 1, 8, 1>}, {transform_indices = @transform_3, window_bounds = array<i64: 1, 1, 32>}, {transform_indices = @transform_4, window_bounds = array<i64: 1, 1, 32>}, {pipeline_mode = #tpu.pipeline_mode<synchronous>, transform_indices = @transform_5, window_bounds = array<i64: 4, 32, 8>}, {pipeline_mode = #tpu.pipeline_mode<synchronous>, transform_indices = @transform_6, window_bounds = array<i64: 4, 32, 8>}, {pipeline_mode = #tpu.pipeline_mode<synchronous>, transform_indices = @transform_7, window_bounds = array<i64: 4, 32, 8>}, {pipeline_mode = #tpu.pipeline_mode<synchronous>, transform_indices = @transform_8, window_bounds = array<i64: 4, 1, 8>}, {pipeline_mode = #tpu.pipeline_mode<synchronous>, transform_indices = @transform_9, window_bounds = array<i64: 4, 1, 8>}, {pipeline_mode = #tpu.pipeline_mode<synchronous>, transform_indices = @transform_10, window_bounds = array<i64: 4, 1, 8>}, {pipeline_mode = #tpu.pipeline_mode<synchronous>, transform_indices = @transform_11, window_bounds = array<i64: 4, 8, 32>}, {pipeline_mode = #tpu.pipeline_mode<synchronous>, transform_indices = @transform_12, window_bounds = array<i64: 1, 32>}, {pipeline_mode = #tpu.pipeline_mode<synchronous>, transform_indices = @transform_13, window_bounds = array<i64: 1, 32>}, {pipeline_mode = #tpu.pipeline_mode<synchronous>, transform_indices = @transform_14, window_bounds = array<i64: 1, 32>}, {pipeline_mode = #tpu.pipeline_mode<synchronous>, transform_indices = @transform_15, window_bounds = array<i64: 96, 64>}, {pipeline_mode = #tpu.pipeline_mode<synchronous>, transform_indices = @transform_16, window_bounds = array<i64: 1, 64>}, {pipeline_mode = #tpu.pipeline_mode<synchronous>, transform_indices = @transform_17, window_bounds = array<i64: 192, 32>}, {pipeline_mode = #tpu.pipeline_mode<synchronous>, transform_indices = @transform_18, window_bounds = array<i64: 1, 32>}, {pipeline_mode = #tpu.pipeline_mode<synchronous>, transform_indices = @transform_19, window_bounds = array<i64: 1, 32>}, {pipeline_mode = #tpu.pipeline_mode<synchronous>, transform_indices = @transform_20, window_bounds = array<i64: 1, 32>}, {transform_indices = @transform_21, window_bounds = array<i64: 1, 8, 32>}]} {
    %c0 = arith.constant 0 : index
    %c0_0 = arith.constant 0 : index
    %c0_1 = arith.constant 0 : index
    %0 = vector.load %arg1[%c0, %c0_0, %c0_1] : memref<1x8x32xf32, #tpu.memory_space<vmem>>, vector<1x8x32xf32>
    %1 = vector.shape_cast %0 : vector<1x8x32xf32> to vector<1x1x8x32xf32>
    %2 = vector.shape_cast %1 : vector<1x1x8x32xf32> to vector<1x1x8x32xf32>
    %3 = vector.broadcast %2 : vector<1x1x8x32xf32> to vector<1x4x8x32xf32>
    %4 = vector.shape_cast %3 : vector<1x4x8x32xf32> to vector<4x8x32xf32>
    %c0_2 = arith.constant 0 : index
    %c0_3 = arith.constant 0 : index
    %c0_4 = arith.constant 0 : index
    %5 = vector.load %arg6[%c0_2, %c0_3, %c0_4] : memref<4x32x8xf32, #tpu.memory_space<vmem>>, vector<4x32x8xf32>
    "tpu.trace_start"() <{level = 10 : i32, message = "nld,nde->nle"}> : () -> ()
    %cst = arith.constant dense<0.000000e+00> : vector<4x8x8xf32>
    %6 = tpu.matmul %4, %5, %cst {dimension_numbers = #tpu.dot_dimension_numbers<[2], [1], [1], [2], [0, 0, 0, 1, 1, 2], [0], [0]>} : vector<4x8x32xf32>, vector<4x32x8xf32>, vector<4x8x8xf32> -> vector<4x8x8xf32>
    "tpu.trace_stop"() : () -> ()
    %c0_5 = arith.constant 0 : index
    %c0_6 = arith.constant 0 : index
    %c0_7 = arith.constant 0 : index
    %7 = vector.load %arg9[%c0_5, %c0_6, %c0_7] : memref<4x1x8xf32, #tpu.memory_space<vmem>>, vector<4x1x8xf32>
    %8 = vector.broadcast %7 : vector<4x1x8xf32> to vector<4x8x8xf32>
    %9 = arith.addf %6, %8 : vector<4x8x8xf32>
    %c0_8 = arith.constant 0 : index
    %c0_9 = arith.constant 0 : index
    %c0_10 = arith.constant 0 : index
    %10 = vector.load %arg7[%c0_8, %c0_9, %c0_10] : memref<4x32x8xf32, #tpu.memory_space<vmem>>, vector<4x32x8xf32>
    "tpu.trace_start"() <{level = 10 : i32, message = "nld,nde->nle"}> : () -> ()
    %cst_11 = arith.constant dense<0.000000e+00> : vector<4x8x8xf32>
    %11 = tpu.matmul %4, %10, %cst_11 {dimension_numbers = #tpu.dot_dimension_numbers<[2], [1], [1], [2], [0, 0, 0, 1, 1, 2], [0], [0]>} : vector<4x8x32xf32>, vector<4x32x8xf32>, vector<4x8x8xf32> -> vector<4x8x8xf32>
    "tpu.trace_stop"() : () -> ()
    %c0_12 = arith.constant 0 : index
    %c0_13 = arith.constant 0 : index
    %c0_14 = arith.constant 0 : index
    %12 = vector.load %arg10[%c0_12, %c0_13, %c0_14] : memref<4x1x8xf32, #tpu.memory_space<vmem>>, vector<4x1x8xf32>
    %13 = vector.broadcast %12 : vector<4x1x8xf32> to vector<4x8x8xf32>
    %14 = arith.addf %11, %13 : vector<4x8x8xf32>
    %c0_15 = arith.constant 0 : index
    %c0_16 = arith.constant 0 : index
    %c0_17 = arith.constant 0 : index
    %15 = vector.load %arg8[%c0_15, %c0_16, %c0_17] : memref<4x32x8xf32, #tpu.memory_space<vmem>>, vector<4x32x8xf32>
    "tpu.trace_start"() <{level = 10 : i32, message = "nld,nde->nle"}> : () -> ()
    %cst_18 = arith.constant dense<0.000000e+00> : vector<4x8x8xf32>
    %16 = tpu.matmul %4, %15, %cst_18 {dimension_numbers = #tpu.dot_dimension_numbers<[2], [1], [1], [2], [0, 0, 0, 1, 1, 2], [0], [0]>} : vector<4x8x32xf32>, vector<4x32x8xf32>, vector<4x8x8xf32> -> vector<4x8x8xf32>
    "tpu.trace_stop"() : () -> ()
    %c0_19 = arith.constant 0 : index
    %c0_20 = arith.constant 0 : index
    %c0_21 = arith.constant 0 : index
    %17 = vector.load %arg11[%c0_19, %c0_20, %c0_21] : memref<4x1x8xf32, #tpu.memory_space<vmem>>, vector<4x1x8xf32>
    %18 = vector.broadcast %17 : vector<4x1x8xf32> to vector<4x8x8xf32>
    %19 = arith.addf %16, %18 : vector<4x8x8xf32>
    "tpu.trace_start"() <{level = 10 : i32, message = "nqd,nkd->nqk"}> : () -> ()
    %cst_22 = arith.constant dense<0.000000e+00> : vector<4x8x8xf32>
    %20 = tpu.matmul %9, %14, %cst_22 {dimension_numbers = #tpu.dot_dimension_numbers<[2], [2], [1], [1], [0, 0, 0, 1, 1, 1], [0], [0]>} : vector<4x8x8xf32>, vector<4x8x8xf32>, vector<4x8x8xf32> -> vector<4x8x8xf32>
    "tpu.trace_stop"() : () -> ()
    %cst_23 = arith.constant 0.353553385 : f32
    %21 = vector.broadcast %cst_23 : f32 to vector<4x8x8xf32>
    %22 = arith.mulf %20, %21 : vector<4x8x8xf32>
    %c0_24 = arith.constant 0 : index
    %c0_25 = arith.constant 0 : index
    %c0_26 = arith.constant 0 : index
    %23 = vector.load %arg2[%c0_24, %c0_25, %c0_26] : memref<4x1x8xf32, #tpu.memory_space<vmem>>, vector<4x1x8xf32>
    %24 = vector.broadcast %23 : vector<4x1x8xf32> to vector<4x8x8xf32>
    %25 = arith.addf %22, %24 : vector<4x8x8xf32>
    %cst_27 = arith.constant dense<0xFF800000> : vector<4x8xf32>
    %26 = vector.multi_reduction <maximumf>, %25, %cst_27 [2] : vector<4x8x8xf32> to vector<4x8xf32>
    %27 = vector.shape_cast %26 : vector<4x8xf32> to vector<4x8x1xf32>
    %28 = vector.broadcast %27 : vector<4x8x1xf32> to vector<4x8x8xf32>
    %29 = arith.subf %25, %28 : vector<4x8x8xf32>
    %30 = math.exp %29 : vector<4x8x8xf32>
    %cst_28 = arith.constant dense<0.000000e+00> : vector<4x8xf32>
    %31 = vector.multi_reduction <add>, %30, %cst_28 [2] : vector<4x8x8xf32> to vector<4x8xf32>
    %32 = vector.shape_cast %31 : vector<4x8xf32> to vector<4x8x1xf32>
    %33 = tpu.reciprocal %32 {approx = true} : vector<4x8x1xf32> -> vector<4x8x1xf32>
    %34 = vector.broadcast %33 : vector<4x8x1xf32> to vector<4x8x8xf32>
    %35 = arith.mulf %30, %34 : vector<4x8x8xf32>
    "tpu.trace_start"() <{level = 10 : i32, message = "nqk,nkd->nqd"}> : () -> ()
    %cst_29 = arith.constant dense<0.000000e+00> : vector<4x8x8xf32>
    %36 = tpu.matmul %35, %19, %cst_29 {dimension_numbers = #tpu.dot_dimension_numbers<[2], [1], [1], [2], [0, 0, 0, 1, 1, 2], [0], [0]>} : vector<4x8x8xf32>, vector<4x8x8xf32>, vector<4x8x8xf32> -> vector<4x8x8xf32>
    "tpu.trace_stop"() : () -> ()
    %c0_30 = arith.constant 0 : index
    %c0_31 = arith.constant 0 : index
    %c0_32 = arith.constant 0 : index
    %37 = vector.load %arg12[%c0_30, %c0_31, %c0_32] : memref<4x8x32xf32, #tpu.memory_space<vmem>>, vector<4x8x32xf32>
    "tpu.trace_start"() <{level = 10 : i32, message = "nld,nde->nle"}> : () -> ()
    %cst_33 = arith.constant dense<0.000000e+00> : vector<4x8x32xf32>
    %38 = tpu.matmul %36, %37, %cst_33 {dimension_numbers = #tpu.dot_dimension_numbers<[2], [1], [1], [2], [0, 0, 0, 1, 1, 2], [0], [0]>} : vector<4x8x8xf32>, vector<4x8x32xf32>, vector<4x8x32xf32> -> vector<4x8x32xf32>
    "tpu.trace_stop"() : () -> ()
    %39 = vector.shape_cast %38 : vector<4x8x32xf32> to vector<1x4x8x32xf32>
    %40 = vector.extract_strided_slice %39 {offsets = [0, 0, 0, 0], sizes = [1, 1, 8, 32], strides = [1, 1, 1, 1]} : vector<1x4x8x32xf32> to vector<1x1x8x32xf32>
    %41 = vector.shape_cast %40 : vector<1x1x8x32xf32> to vector<1x8x32xf32>
    %42 = vector.extract_strided_slice %39 {offsets = [0, 1, 0, 0], sizes = [1, 1, 8, 32], strides = [1, 1, 1, 1]} : vector<1x4x8x32xf32> to vector<1x1x8x32xf32>
    %43 = vector.shape_cast %42 : vector<1x1x8x32xf32> to vector<1x8x32xf32>
    %44 = arith.addf %41, %43 : vector<1x8x32xf32>
    %45 = vector.extract_strided_slice %39 {offsets = [0, 2, 0, 0], sizes = [1, 1, 8, 32], strides = [1, 1, 1, 1]} : vector<1x4x8x32xf32> to vector<1x1x8x32xf32>
    %46 = vector.shape_cast %45 : vector<1x1x8x32xf32> to vector<1x8x32xf32>
    %47 = arith.addf %44, %46 : vector<1x8x32xf32>
    %48 = vector.extract_strided_slice %39 {offsets = [0, 3, 0, 0], sizes = [1, 1, 8, 32], strides = [1, 1, 1, 1]} : vector<1x4x8x32xf32> to vector<1x1x8x32xf32>
    %49 = vector.shape_cast %48 : vector<1x1x8x32xf32> to vector<1x8x32xf32>
    %50 = arith.addf %47, %49 : vector<1x8x32xf32>
    %51 = arith.addf %50, %0 : vector<1x8x32xf32>
    %52 = vector.shape_cast %51 : vector<1x8x32xf32> to vector<8x32xf32>
    %c0_34 = arith.constant 0 : index
    %c0_35 = arith.constant 0 : index
    %53 = vector.load %arg13[%c0_34, %c0_35] : memref<1x32xf32, #tpu.memory_space<vmem>>, vector<1x32xf32>
    %54 = vector.broadcast %53 : vector<1x32xf32> to vector<8x32xf32>
    %55 = arith.addf %52, %54 : vector<8x32xf32>
    %c0_36 = arith.constant 0 : index
    %c0_37 = arith.constant 0 : index
    %56 = vector.load %arg14[%c0_36, %c0_37] : memref<1x32xf32, #tpu.memory_space<vmem>>, vector<1x32xf32>
    %c0_38 = arith.constant 0 : index
    %c0_39 = arith.constant 0 : index
    %57 = vector.load %arg15[%c0_38, %c0_39] : memref<1x32xf32, #tpu.memory_space<vmem>>, vector<1x32xf32>
    %cst_40 = arith.constant dense<0.000000e+00> : vector<8xf32>
    %58 = vector.multi_reduction <add>, %55, %cst_40 [1] : vector<8x32xf32> to vector<8xf32>
    %59 = vector.shape_cast %58 : vector<8xf32> to vector<8x1xf32>
    %cst_41 = arith.constant 3.200000e+01 : f32
    %60 = vector.broadcast %cst_41 : f32 to vector<8x1xf32>
    %61 = arith.divf %59, %60 : vector<8x1xf32>
    %62 = vector.broadcast %61 : vector<8x1xf32> to vector<8x32xf32>
    %63 = arith.subf %55, %62 : vector<8x32xf32>
    %64 = arith.mulf %63, %63 : vector<8x32xf32>
    %cst_42 = arith.constant dense<0.000000e+00> : vector<8xf32>
    %65 = vector.multi_reduction <add>, %64, %cst_42 [1] : vector<8x32xf32> to vector<8xf32>
    %66 = vector.shape_cast %65 : vector<8xf32> to vector<8x1xf32>
    %cst_43 = arith.constant 3.200000e+01 : f32
    %67 = vector.broadcast %cst_43 : f32 to vector<8x1xf32>
    %68 = arith.divf %66, %67 : vector<8x1xf32>
    %69 = vector.broadcast %61 : vector<8x1xf32> to vector<8x32xf32>
    %70 = arith.subf %55, %69 : vector<8x32xf32>
    %cst_44 = arith.constant 9.99999974E-6 : f32
    %71 = vector.broadcast %cst_44 : f32 to vector<8x1xf32>
    %72 = arith.addf %68, %71 : vector<8x1xf32>
    %73 = math.rsqrt %72 : vector<8x1xf32>
    %74 = vector.broadcast %73 : vector<8x1xf32> to vector<8x32xf32>
    %75 = arith.mulf %70, %74 : vector<8x32xf32>
    %76 = vector.broadcast %56 : vector<1x32xf32> to vector<8x32xf32>
    %77 = arith.mulf %75, %76 : vector<8x32xf32>
    %78 = vector.broadcast %57 : vector<1x32xf32> to vector<8x32xf32>
    %79 = arith.addf %77, %78 : vector<8x32xf32>
    %c0_45 = arith.constant 0 : index
    %c0_46 = arith.constant 0 : index
    %c0_47 = arith.constant 0 : index
    %80 = vector.load %arg3[%c0_45, %c0_46, %c0_47] : memref<1x8x1xf32, #tpu.memory_space<vmem>>, vector<1x8x1xf32>
    %81 = vector.shape_cast %80 : vector<1x8x1xf32> to vector<8x1xf32>
    %82 = vector.broadcast %81 : vector<8x1xf32> to vector<8x32xf32>
    %83 = arith.mulf %79, %82 : vector<8x32xf32>
    %84 = tpu.iota {dimensions = array<i32: 0>} : vector<8x1xi32>
    %c8_i32 = arith.constant 8 : i32
    %c0_i32 = arith.constant 0 : i32
    %85 = arith.cmpi eq, %c8_i32, %c0_i32 : i32
    %c1_i32 = arith.constant 1 : i32
    %86 = arith.select %85, %c1_i32, %c8_i32 : i32
    %87 = vector.broadcast %86 : i32 to vector<8x1xi32>
    %88 = arith.remsi %84, %87 : vector<8x1xi32>
    %c0_i32_48 = arith.constant 0 : i32
    %89 = vector.broadcast %c0_i32_48 : i32 to vector<8x1xi32>
    %90 = arith.cmpi ne, %88, %89 : vector<8x1xi32>
    %c0_i32_49 = arith.constant 0 : i32
    %91 = vector.broadcast %c0_i32_49 : i32 to vector<8x1xi32>
    %92 = arith.cmpi slt, %88, %91 : vector<8x1xi32>
    %c0_i32_50 = arith.constant 0 : i32
    %93 = arith.cmpi slt, %86, %c0_i32_50 : i32
    %94 = vector.broadcast %93 : i1 to vector<8x1xi1>
    %95 = vector.broadcast %94 : vector<8x1xi1> to vector<8x1xi1>
    %96 = arith.xori %92, %95 : vector<8x1xi1>
    %97 = arith.andi %96, %90 : vector<8x1xi1>
    %98 = vector.broadcast %86 : i32 to vector<8x1xi32>
    %99 = arith.addi %88, %98 : vector<8x1xi32>
    %100 = arith.select %97, %99, %88 : vector<8x1xi1>, vector<8x1xi32>
    %cst_51 = arith.constant 0.000000e+00 : f32
    %101 = vector.broadcast %cst_51 : f32 to vector<1x32xf32>
    %102 = vector.extract_strided_slice %83 {offsets = [0, 0], sizes = [7, 32], strides = [1, 1]} : vector<8x32xf32> to vector<7x32xf32>
    %103 = tpu.concatenate %101, %102 in 0 : vector<1x32xf32>, vector<7x32xf32> -> vector<8x32xf32>
    %c-1_i32 = arith.constant -1 : i32
    %104 = vector.broadcast %c-1_i32 : i32 to vector<8x1xi32>
    %105 = arith.addi %100, %104 : vector<8x1xi32>
    %c0_i32_52 = arith.constant 0 : i32
    %106 = vector.broadcast %c0_i32_52 : i32 to vector<8x1xi32>
    %107 = arith.cmpi sge, %105, %106 : vector<8x1xi32>
    %c-1_i32_53 = arith.constant -1 : i32
    %108 = vector.broadcast %c-1_i32_53 : i32 to vector<8x1xi32>
    %109 = arith.addi %100, %108 : vector<8x1xi32>
    %c8_i32_54 = arith.constant 8 : i32
    %110 = vector.broadcast %c8_i32_54 : i32 to vector<8x1xi32>
    %111 = arith.cmpi slt, %109, %110 : vector<8x1xi32>
    %112 = arith.andi %107, %111 : vector<8x1xi1>
    %cst_55 = arith.constant 0.000000e+00 : f32
    %113 = vector.broadcast %cst_55 : f32 to vector<8x32xf32>
    %114 = vector.shape_cast %112 : vector<8x1xi1> to vector<8x1xi1>
    %115 = vector.broadcast %114 : vector<8x1xi1> to vector<8x32xi1>
    %116 = arith.select %115, %103, %113 : vector<8x32xi1>, vector<8x32xf32>
    %cst_56 = arith.constant 0.000000e+00 : f32
    %117 = vector.broadcast %cst_56 : f32 to vector<1x32xf32>
    %118 = vector.extract_strided_slice %83 {offsets = [1, 0], sizes = [7, 32], strides = [1, 1]} : vector<8x32xf32> to vector<7x32xf32>
    %119 = tpu.concatenate %118, %117 in 0 : vector<7x32xf32>, vector<1x32xf32> -> vector<8x32xf32>
    %c1_i32_57 = arith.constant 1 : i32
    %120 = vector.broadcast %c1_i32_57 : i32 to vector<8x1xi32>
    %121 = arith.addi %100, %120 : vector<8x1xi32>
    %c0_i32_58 = arith.constant 0 : i32
    %122 = vector.broadcast %c0_i32_58 : i32 to vector<8x1xi32>
    %123 = arith.cmpi sge, %121, %122 : vector<8x1xi32>
    %c1_i32_59 = arith.constant 1 : i32
    %124 = vector.broadcast %c1_i32_59 : i32 to vector<8x1xi32>
    %125 = arith.addi %100, %124 : vector<8x1xi32>
    %c8_i32_60 = arith.constant 8 : i32
    %126 = vector.broadcast %c8_i32_60 : i32 to vector<8x1xi32>
    %127 = arith.cmpi slt, %125, %126 : vector<8x1xi32>
    %128 = arith.andi %123, %127 : vector<8x1xi1>
    %cst_61 = arith.constant 0.000000e+00 : f32
    %129 = vector.broadcast %cst_61 : f32 to vector<8x32xf32>
    %130 = vector.shape_cast %128 : vector<8x1xi1> to vector<8x1xi1>
    %131 = vector.broadcast %130 : vector<8x1xi1> to vector<8x32xi1>
    %132 = arith.select %131, %119, %129 : vector<8x32xi1>, vector<8x32xf32>
    %133 = tpu.concatenate %116, %83, %132 in 1 : vector<8x32xf32>, vector<8x32xf32>, vector<8x32xf32> -> vector<8x96xf32>
    %c0_62 = arith.constant 0 : index
    %c0_63 = arith.constant 0 : index
    %134 = vector.load %arg16[%c0_62, %c0_63] : memref<96x64xf32, #tpu.memory_space<vmem>>, vector<96x64xf32>
    %cst_64 = arith.constant dense<0.000000e+00> : vector<8x64xf32>
    %135 = tpu.matmul %133, %134, %cst_64 {dimension_numbers = #tpu.dot_dimension_numbers<[1], [0], [0], [1], [0, 0, 1, 1], [], []>} : vector<8x96xf32>, vector<96x64xf32>, vector<8x64xf32> -> vector<8x64xf32>
    %c0_65 = arith.constant 0 : index
    %c0_66 = arith.constant 0 : index
    %136 = vector.load %arg17[%c0_65, %c0_66] : memref<1x64xf32, #tpu.memory_space<vmem>>, vector<1x64xf32>
    %137 = vector.broadcast %136 : vector<1x64xf32> to vector<8x64xf32>
    %138 = arith.addf %135, %137 : vector<8x64xf32>
    %cst_67 = arith.constant 0.000000e+00 : f32
    %139 = vector.broadcast %cst_67 : f32 to vector<8x64xf32>
    %140 = arith.maximumf %138, %139 : vector<8x64xf32>
    %cst_68 = arith.constant 0.000000e+00 : f32
    %141 = vector.broadcast %cst_68 : f32 to vector<1x64xf32>
    %142 = vector.extract_strided_slice %140 {offsets = [0, 0], sizes = [7, 64], strides = [1, 1]} : vector<8x64xf32> to vector<7x64xf32>
    %143 = tpu.concatenate %141, %142 in 0 : vector<1x64xf32>, vector<7x64xf32> -> vector<8x64xf32>
    %c-1_i32_69 = arith.constant -1 : i32
    %144 = vector.broadcast %c-1_i32_69 : i32 to vector<8x1xi32>
    %145 = arith.addi %100, %144 : vector<8x1xi32>
    %c0_i32_70 = arith.constant 0 : i32
    %146 = vector.broadcast %c0_i32_70 : i32 to vector<8x1xi32>
    %147 = arith.cmpi sge, %145, %146 : vector<8x1xi32>
    %c-1_i32_71 = arith.constant -1 : i32
    %148 = vector.broadcast %c-1_i32_71 : i32 to vector<8x1xi32>
    %149 = arith.addi %100, %148 : vector<8x1xi32>
    %c8_i32_72 = arith.constant 8 : i32
    %150 = vector.broadcast %c8_i32_72 : i32 to vector<8x1xi32>
    %151 = arith.cmpi slt, %149, %150 : vector<8x1xi32>
    %152 = arith.andi %147, %151 : vector<8x1xi1>
    %cst_73 = arith.constant 0.000000e+00 : f32
    %153 = vector.broadcast %cst_73 : f32 to vector<8x64xf32>
    %154 = vector.shape_cast %152 : vector<8x1xi1> to vector<8x1xi1>
    %155 = vector.broadcast %154 : vector<8x1xi1> to vector<8x64xi1>
    %156 = arith.select %155, %143, %153 : vector<8x64xi1>, vector<8x64xf32>
    %cst_74 = arith.constant 0.000000e+00 : f32
    %157 = vector.broadcast %cst_74 : f32 to vector<1x64xf32>
    %158 = vector.extract_strided_slice %140 {offsets = [1, 0], sizes = [7, 64], strides = [1, 1]} : vector<8x64xf32> to vector<7x64xf32>
    %159 = tpu.concatenate %158, %157 in 0 : vector<7x64xf32>, vector<1x64xf32> -> vector<8x64xf32>
    %c1_i32_75 = arith.constant 1 : i32
    %160 = vector.broadcast %c1_i32_75 : i32 to vector<8x1xi32>
    %161 = arith.addi %100, %160 : vector<8x1xi32>
    %c0_i32_76 = arith.constant 0 : i32
    %162 = vector.broadcast %c0_i32_76 : i32 to vector<8x1xi32>
    %163 = arith.cmpi sge, %161, %162 : vector<8x1xi32>
    %c1_i32_77 = arith.constant 1 : i32
    %164 = vector.broadcast %c1_i32_77 : i32 to vector<8x1xi32>
    %165 = arith.addi %100, %164 : vector<8x1xi32>
    %c8_i32_78 = arith.constant 8 : i32
    %166 = vector.broadcast %c8_i32_78 : i32 to vector<8x1xi32>
    %167 = arith.cmpi slt, %165, %166 : vector<8x1xi32>
    %168 = arith.andi %163, %167 : vector<8x1xi1>
    %cst_79 = arith.constant 0.000000e+00 : f32
    %169 = vector.broadcast %cst_79 : f32 to vector<8x64xf32>
    %170 = vector.shape_cast %168 : vector<8x1xi1> to vector<8x1xi1>
    %171 = vector.broadcast %170 : vector<8x1xi1> to vector<8x64xi1>
    %172 = arith.select %171, %159, %169 : vector<8x64xi1>, vector<8x64xf32>
    %173 = tpu.concatenate %156, %140, %172 in 1 : vector<8x64xf32>, vector<8x64xf32>, vector<8x64xf32> -> vector<8x192xf32>
    %c0_80 = arith.constant 0 : index
    %c0_81 = arith.constant 0 : index
    %174 = vector.load %arg18[%c0_80, %c0_81] : memref<192x32xf32, #tpu.memory_space<vmem>>, vector<192x32xf32>
    %cst_82 = arith.constant dense<0.000000e+00> : vector<8x32xf32>
    %175 = tpu.matmul %173, %174, %cst_82 {dimension_numbers = #tpu.dot_dimension_numbers<[1], [0], [0], [1], [0, 0, 1, 1], [], []>} : vector<8x192xf32>, vector<192x32xf32>, vector<8x32xf32> -> vector<8x32xf32>
    %c0_83 = arith.constant 0 : index
    %c0_84 = arith.constant 0 : index
    %176 = vector.load %arg19[%c0_83, %c0_84] : memref<1x32xf32, #tpu.memory_space<vmem>>, vector<1x32xf32>
    %177 = vector.broadcast %176 : vector<1x32xf32> to vector<8x32xf32>
    %178 = arith.addf %175, %177 : vector<8x32xf32>
    %179 = arith.addf %178, %83 : vector<8x32xf32>
    %c0_85 = arith.constant 0 : index
    %c0_86 = arith.constant 0 : index
    %180 = vector.load %arg20[%c0_85, %c0_86] : memref<1x32xf32, #tpu.memory_space<vmem>>, vector<1x32xf32>
    %c0_87 = arith.constant 0 : index
    %c0_88 = arith.constant 0 : index
    %181 = vector.load %arg21[%c0_87, %c0_88] : memref<1x32xf32, #tpu.memory_space<vmem>>, vector<1x32xf32>
    %cst_89 = arith.constant dense<0.000000e+00> : vector<8xf32>
    %182 = vector.multi_reduction <add>, %179, %cst_89 [1] : vector<8x32xf32> to vector<8xf32>
    %183 = vector.shape_cast %182 : vector<8xf32> to vector<8x1xf32>
    %cst_90 = arith.constant 3.200000e+01 : f32
    %184 = vector.broadcast %cst_90 : f32 to vector<8x1xf32>
    %185 = arith.divf %183, %184 : vector<8x1xf32>
    %186 = vector.broadcast %185 : vector<8x1xf32> to vector<8x32xf32>
    %187 = arith.subf %179, %186 : vector<8x32xf32>
    %188 = arith.mulf %187, %187 : vector<8x32xf32>
    %cst_91 = arith.constant dense<0.000000e+00> : vector<8xf32>
    %189 = vector.multi_reduction <add>, %188, %cst_91 [1] : vector<8x32xf32> to vector<8xf32>
    %190 = vector.shape_cast %189 : vector<8xf32> to vector<8x1xf32>
    %cst_92 = arith.constant 3.200000e+01 : f32
    %191 = vector.broadcast %cst_92 : f32 to vector<8x1xf32>
    %192 = arith.divf %190, %191 : vector<8x1xf32>
    %193 = vector.broadcast %185 : vector<8x1xf32> to vector<8x32xf32>
    %194 = arith.subf %179, %193 : vector<8x32xf32>
    %cst_93 = arith.constant 9.99999974E-6 : f32
    %195 = vector.broadcast %cst_93 : f32 to vector<8x1xf32>
    %196 = arith.addf %192, %195 : vector<8x1xf32>
    %197 = math.rsqrt %196 : vector<8x1xf32>
    %198 = vector.broadcast %197 : vector<8x1xf32> to vector<8x32xf32>
    %199 = arith.mulf %194, %198 : vector<8x32xf32>
    %200 = vector.broadcast %180 : vector<1x32xf32> to vector<8x32xf32>
    %201 = arith.mulf %199, %200 : vector<8x32xf32>
    %202 = vector.broadcast %181 : vector<1x32xf32> to vector<8x32xf32>
    %203 = arith.addf %201, %202 : vector<8x32xf32>
    %204 = vector.shape_cast %203 : vector<8x32xf32> to vector<1x8x32xf32>
    %c0_94 = arith.constant 0 : index
    %c0_95 = arith.constant 0 : index
    %c0_96 = arith.constant 0 : index
    %205 = vector.load %arg4[%c0_94, %c0_95, %c0_96] : memref<1x1x32xf32, #tpu.memory_space<vmem>>, vector<1x1x32xf32>
    %206 = vector.broadcast %205 : vector<1x1x32xf32> to vector<1x8x32xf32>
    %207 = arith.mulf %206, %204 : vector<1x8x32xf32>
    %c0_97 = arith.constant 0 : index
    %c0_98 = arith.constant 0 : index
    %c0_99 = arith.constant 0 : index
    %208 = vector.load %arg5[%c0_97, %c0_98, %c0_99] : memref<1x1x32xf32, #tpu.memory_space<vmem>>, vector<1x1x32xf32>
    %209 = vector.broadcast %208 : vector<1x1x32xf32> to vector<1x8x32xf32>
    %210 = arith.addf %207, %209 : vector<1x8x32xf32>
    %211 = vector.broadcast %80 : vector<1x8x1xf32> to vector<1x8x32xf32>
    %212 = arith.mulf %210, %211 : vector<1x8x32xf32>
    %c0_100 = arith.constant 0 : index
    %c0_101 = arith.constant 0 : index
    %c0_102 = arith.constant 0 : index
    %213 = vector.load %arg22[%c0_100, %c0_101, %c0_102] : memref<1x8x32xf32, #tpu.memory_space<vmem>>, vector<1x8x32xf32>
    tpu.vector_store %arg22[%c0_100, %c0_101, %c0_102], %212 {strides = array<i32>} : memref<1x8x32xf32, #tpu.memory_space<vmem>>, vector<1x8x32xf32>,
    return
  }
  func.func @transform_0(%arg0: i32) -> (i32, i32, i32) {
    %c0_i32 = arith.constant 0 : i32
    %c0_i32_0 = arith.constant 0 : i32
    %c0_i32_1 = arith.constant 0 : i32
    return %arg0, %c0_i32, %c0_i32_0 : i32, i32, i32
  }
  func.func @transform_1(%arg0: i32) -> (i32, i32, i32) {
    %c0_i32 = arith.constant 0 : i32
    %c0_i32_0 = arith.constant 0 : i32
    %c0_i32_1 = arith.constant 0 : i32
    return %arg0, %c0_i32, %c0_i32_0 : i32, i32, i32
  }
  func.func @transform_2(%arg0: i32) -> (i32, i32, i32) {
    %c0_i32 = arith.constant 0 : i32
    %c0_i32_0 = arith.constant 0 : i32
    %c0_i32_1 = arith.constant 0 : i32
    return %arg0, %c0_i32, %c0_i32_0 : i32, i32, i32
  }
  func.func @transform_3(%arg0: i32) -> (i32, i32, i32) {
    %c0_i32 = arith.constant 0 : i32
    %c0_i32_0 = arith.constant 0 : i32
    %c0_i32_1 = arith.constant 0 : i32
    return %arg0, %c0_i32, %c0_i32_0 : i32, i32, i32
  }
  func.func @transform_4(%arg0: i32) -> (i32, i32, i32) {
    %c0_i32 = arith.constant 0 : i32
    %c0_i32_0 = arith.constant 0 : i32
    %c0_i32_1 = arith.constant 0 : i32
    return %arg0, %c0_i32, %c0_i32_0 : i32, i32, i32
  }
  func.func @transform_5(%arg0: i32) -> (i32, i32, i32) {
    %c0_i32 = arith.constant 0 : i32
    %c0_i32_0 = arith.constant 0 : i32
    %c0_i32_1 = arith.constant 0 : i32
    %c0_i32_2 = arith.constant 0 : i32
    return %c0_i32, %c0_i32_0, %c0_i32_1 : i32, i32, i32
  }
  func.func @transform_6(%arg0: i32) -> (i32, i32, i32) {
    %c0_i32 = arith.constant 0 : i32
    %c0_i32_0 = arith.constant 0 : i32
    %c0_i32_1 = arith.constant 0 : i32
    %c0_i32_2 = arith.constant 0 : i32
    return %c0_i32, %c0_i32_0, %c0_i32_1 : i32, i32, i32
  }
  func.func @transform_7(%arg0: i32) -> (i32, i32, i32) {
    %c0_i32 = arith.constant 0 : i32
    %c0_i32_0 = arith.constant 0 : i32
    %c0_i32_1 = arith.constant 0 : i32
    %c0_i32_2 = arith.constant 0 : i32
    return %c0_i32, %c0_i32_0, %c0_i32_1 : i32, i32, i32
  }
  func.func @transform_8(%arg0: i32) -> (i32, i32, i32) {
    %c0_i32 = arith.constant 0 : i32
    %c0_i32_0 = arith.constant 0 : i32
    %c0_i32_1 = arith.constant 0 : i32
    %c0_i32_2 = arith.constant 0 : i32
    return %c0_i32, %c0_i32_0, %c0_i32_1 : i32, i32, i32
  }
  func.func @transform_9(%arg0: i32) -> (i32, i32, i32) {
    %c0_i32 = arith.constant 0 : i32
    %c0_i32_0 = arith.constant 0 : i32
    %c0_i32_1 = arith.constant 0 : i32
    %c0_i32_2 = arith.constant 0 : i32
    return %c0_i32, %c0_i32_0, %c0_i32_1 : i32, i32, i32
  }
  func.func @transform_10(%arg0: i32) -> (i32, i32, i32) {
    %c0_i32 = arith.constant 0 : i32
    %c0_i32_0 = arith.constant 0 : i32
    %c0_i32_1 = arith.constant 0 : i32
    %c0_i32_2 = arith.constant 0 : i32
    return %c0_i32, %c0_i32_0, %c0_i32_1 : i32, i32, i32
  }
  func.func @transform_11(%arg0: i32) -> (i32, i32, i32) {
    %c0_i32 = arith.constant 0 : i32
    %c0_i32_0 = arith.constant 0 : i32
    %c0_i32_1 = arith.constant 0 : i32
    %c0_i32_2 = arith.constant 0 : i32
    return %c0_i32, %c0_i32_0, %c0_i32_1 : i32, i32, i32
  }
  func.func @transform_12(%arg0: i32) -> (i32, i32) {
    %c0_i32 = arith.constant 0 : i32
    %c0_i32_0 = arith.constant 0 : i32
    %c0_i32_1 = arith.constant 0 : i32
    return %c0_i32, %c0_i32_0 : i32, i32
  }
  func.func @transform_13(%arg0: i32) -> (i32, i32) {
    %c0_i32 = arith.constant 0 : i32
    %c0_i32_0 = arith.constant 0 : i32
    %c0_i32_1 = arith.constant 0 : i32
    return %c0_i32, %c0_i32_0 : i32, i32
  }
  func.func @transform_14(%arg0: i32) -> (i32, i32) {
    %c0_i32 = arith.constant 0 : i32
    %c0_i32_0 = arith.constant 0 : i32
    %c0_i32_1 = arith.constant 0 : i32
    return %c0_i32, %c0_i32_0 : i32, i32
  }
  func.func @transform_15(%arg0: i32) -> (i32, i32) {
    %c0_i32 = arith.constant 0 : i32
    %c0_i32_0 = arith.constant 0 : i32
    %c0_i32_1 = arith.constant 0 : i32
    return %c0_i32, %c0_i32_0 : i32, i32
  }
  func.func @transform_16(%arg0: i32) -> (i32, i32) {
    %c0_i32 = arith.constant 0 : i32
    %c0_i32_0 = arith.constant 0 : i32
    %c0_i32_1 = arith.constant 0 : i32
    return %c0_i32, %c0_i32_0 : i32, i32
  }
  func.func @transform_17(%arg0: i32) -> (i32, i32) {
    %c0_i32 = arith.constant 0 : i32
    %c0_i32_0 = arith.constant 0 : i32
    %c0_i32_1 = arith.constant 0 : i32
    return %c0_i32, %c0_i32_0 : i32, i32
  }
  func.func @transform_18(%arg0: i32) -> (i32, i32) {
    %c0_i32 = arith.constant 0 : i32
    %c0_i32_0 = arith.constant 0 : i32
    %c0_i32_1 = arith.constant 0 : i32
    return %c0_i32, %c0_i32_0 : i32, i32
  }
  func.func @transform_19(%arg0: i32) -> (i32, i32) {
    %c0_i32 = arith.constant 0 : i32
    %c0_i32_0 = arith.constant 0 : i32
    %c0_i32_1 = arith.constant 0 : i32
    return %c0_i32, %c0_i32_0 : i32, i32
  }
  func.func @transform_20(%arg0: i32) -> (i32, i32) {
    %c0_i32 = arith.constant 0 : i32
    %c0_i32_0 = arith.constant 0 : i32
    %c0_i32_1 = arith.constant 0 : i32
    return %c0_i32, %c0_i32_0 : i32, i32
  }
  func.func @transform_21(%arg0: i32) -> (i32, i32, i32) {
    %c0_i32 = arith.constant 0 : i32
    %c0_i32_0 = arith.constant 0 : i32
    %c0_i32_1 = arith.constant 0 : i32
    return %arg0, %c0_i32, %c0_i32_0 : i32, i32, i32
  }
}

</mosaic_0001>

<bundles_post_ra>
// kernel: tpu_custom_call.1
= control target key start
LH: loop header
LB: loop body
LE: loop exit
PB: predicated region body
PF: predicated region fallthrough
CT: control target
= control target key end

     0   :  { %s4532_s0 = inlined_call_operand.vmem [shape: f32[2,8,32], index: 0, kind: input, shape index: {}]   ;;  %s4533_s1 = inlined_call_operand.vmem [shape: f32[8,1,8], index: 1, kind: input, shape index: {}]   ;;  %s4534_s2 = inlined_call_operand.vmem [shape: f32[2,8,1], index: 2, kind: input, shape index: {}]   ;;  %s4535_s3 = inlined_call_operand.vmem [shape: f32[2,1,32], index: 3, kind: input, shape index: {}]   ;;  %s4536_s4 = inlined_call_operand.vmem [shape: f32[2,1,32], index: 4, kind: input, shape index: {}]   ;;  %s4537_s5 = inlined_call_operand.vmem [shape: f32[4,32,8], index: 5, kind: input, shape index: {}]   ;;  %s4538_s6 = inlined_call_operand.vmem [shape: f32[4,32,8], index: 6, kind: input, shape index: {}]   ;;  %s4539_s7 = inlined_call_operand.vmem [shape: f32[4,32,8], index: 7, kind: input, shape index: {}]   ;;  %s4540_s8 = inlined_call_operand.vmem [shape: f32[4,1,8], index: 8, kind: input, shape index: {}]   ;;  %s4541_s9 = inlined_call_operand.vmem [shape: f32[4,1,8], index: 9, kind: input, shape index: {}]   ;;  %s4542_s10 = inlined_call_operand.vmem [shape: f32[4,1,8], index: 10, kind: input, shape index: {}]   ;;  %s4543_s11 = inlined_call_operand.vmem [shape: f32[4,8,32], index: 11, kind: input, shape index: {}]   ;;  %s4544_s12 = inlined_call_operand.vmem [shape: f32[1,32], index: 12, kind: input, shape index: {}]   ;;  %s4545_s13 = inlined_call_operand.vmem [shape: f32[1,32], index: 13, kind: input, shape index: {}]   ;;  %s4546_s14 = inlined_call_operand.vmem [shape: f32[1,32], index: 14, kind: input, shape index: {}]   ;;  %s4547_s15 = inlined_call_operand.vmem [shape: f32[96,64], index: 15, kind: input, shape index: {}]   ;;  %s4548_s16 = inlined_call_operand.vmem [shape: f32[1,64], index: 16, kind: input, shape index: {}]   ;;  %s4549_s17 = inlined_call_operand.vmem [shape: f32[192,32], index: 17, kind: input, shape index: {}]   ;;  %s4550_s18 = inlined_call_operand.vmem [shape: f32[1,32], index: 18, kind: input, shape index: {}]   ;;  %s4551_s19 = inlined_call_operand.vmem [shape: f32[1,32], index: 19, kind: input, shape index: {}]   ;;  %s4552_s20 = inlined_call_operand.vmem [shape: f32[1,32], index: 20, kind: input, shape index: {}]   ;;  %s4553_s21 = inlined_call_operand.hbm [shape: f32[2,8,32], index: 21, kind: output, shape index: {}]  }
   0x1   :  { %4562 = sst [smem:[#allocation11_spill]] %s4532_s0 }
   0x2   :  { %4563 = sst [smem:[#allocation12_spill]] %s4533_s1 }
   0x3   :  { %4564 = sst [smem:[#allocation13_spill]] %s4534_s2 }
   0x4   :  { %4565 = sst [smem:[#allocation14_spill]] %s4535_s3 }
   0x5   :  { %4566 = sst [smem:[#allocation15_spill]] %s4536_s4 }
   0x6   :  { %4567 = sst [smem:[#allocation16_spill]] %s4537_s5 }
   0x7   :  { %4568 = sst [smem:[#allocation17_spill]] %s4538_s6 }
   0x8   :  { %4569 = sst [smem:[#allocation18_spill]] %s4539_s7 }
   0x9   :  { %4570 = sst [smem:[#allocation19_spill]] %s4540_s8 }
   0xa   :  { %4571 = sst [smem:[#allocation20_spill]] %s4541_s9 }
   0xb   :  { %4572 = sst [smem:[#allocation21_spill]] %s4553_s21 }
   0xc   :  { %26 = vsyncpa [#allocation3], 0 }
   0xd   :  { %28 = vsyncpa [#allocation3 + $0x1], 0  ;;  %s3889_s2 = smov 0   ;;  %s3891_s25 = smov 0  }
   0xe   :  { %s3893_s26 = smov 0   ;;  %s3895_s27 = smov 0  }
   0xf LB: > { %4573 = sst [smem:[#allocation5_spill]] %s3758_s2  ;;  %s3910_s3 = sadd.s32 4294967295, %s3770_s27   ;;  %s3770_s27 = sphi %s3895_s27, %s4596_s27   ;;  %s3766_s26 = sphi %s3893_s26, %s4598_s26   ;;  %s3762_s25 = sphi %s3891_s25, %s4600_s25   ;;  %s3758_s2 = sphi %s3889_s2, %s4599_s2  }
  0x10   : > { %4574 = sst [smem:[#allocation6_spill]] %s3766_s26  ;;  %s3133_s28 = sadd.s32 4294967294, %s3770_s27  }
  0x11   : > { %4575 = sst [smem:[#allocation7_spill]] %s3770_s27  ;;  %s3914_s29 = sadd.s32 1, %s3770_s27  }
  0x12   : > { %4576 = sst [smem:[#allocation8_spill]] %s3914_s29  ;;  %s507_s0 = sadd.s32 1, %s3766_s26 }
  0x13   : > { %s504_s4 = ssub.s32 %s3770_s27, %s3914_s29  ;;  %p517_p0 = scmp.ne.s32.totalorder %s3766_s26, %s3762_s25 }
  0x14   : > { %p505_p1 = scmp.eq.s32.totalorder %s504_s4, 0  ;;  %p518_p2 = scmp.eq.s32.totalorder %s3910_s3, 1 }
  0x15   : > { %p523_p3 = scmp.ne.s32.totalorder %s3762_s25, %s3758_s2  ;;  %p524_p4 = scmp.eq.s32.totalorder %s3133_s28, 1 }
  0x16   : > { %s3925_s30 = scalar_select %p505_p1, %s3766_s26, %s507_s0  }
  0x17   : > { %p3927_p5 = por %p518_p2, %p517_p0  ;;  %p3931_p6 = por %p524_p4, %p523_p3 }
  0x18   : > { %4577 = sst [smem:[#allocation9_spill]] %s3925_s30  ;;  %p3136_p7 = scmp.ge.s32.totalorder %s3770_s27, 1 }
  0x19   : > { %s4579_s22 = scalar_select %p3931_p6, 1, 0 }
  0x1a   : > { %p624_p8 = scmp.lt.s32.totalorder %s3770_s27, 3 }
  0x1b   : > { %4580 = sst [smem:[#allocation10_spill]] %s4579_s22 }
  0x1c   : > { %p625_p9 = pnand %p3136_p7, %p624_p8 }
  0x1d   : > { %s4581_s24 = sld [smem:[#allocation16_spill]] (!%p625_p9)  ;;  %v3772_v3 = vmov (!%p625_p9), 0.0|0.0   ;;  %p697_p10 = scmp.lt.s32.totalorder (!%p625_p9), %s3910_s3, 1  ;;  %vm3773_vm0 = vmmov (!%p625_p9), 0   ;;  %v3774_v11 = vmov (!%p625_p9), 0.0   ;;  %vm761_vm1 = vcmask (!%p625_p9), 261120  }
  0x1e   : > { %628 = sbr.rel (%p625_p9) target bundleno = 2574 (0xa0e), region = 104  ;;  %3516 = vmatprep.subr.bf16.mxu0 (!%p625_p9), %v3772_v3  ;;  %3534 = vmatprep.subr.bf16.mxu1 (!%p625_p9), %v3772_v3  ;;  %s4582_s6 = sld [smem:[#allocation17_spill]] (!%p625_p9)  ;;  %vm1693_vm2 = vcmask (!%p625_p9), 64512   ;;  %vm2743_vm3 = vcmask (!%p625_p9), 1046528   ;;  %vm2732_vm5 = vcmask (!%p625_p9), 1040384   ;;  %vm2760_vm7 = vcmask (!%p625_p9), 523264  }
  0x1f   : > { %3305 = vmatprep.mubr.msk.f32.mxu0 (!%p625_p9), %vm3773_vm0, %v3774_v11  ;;  %3338 = vmatprep.mubr.msk.f32.mxu1 (!%p625_p9), %vm3773_vm0, %v3774_v11  ;;  %s4583_s2 = sld [smem:[#allocation11_spill]] (!%p625_p9)  ;;  %s4584_s7 = sld [smem:[#allocation18_spill]] (!%p625_p9)  ;;  %vm2781_vm8 = vcmask (!%p625_p9), 785408  }
  0x20   : > { %s4585_s9 = sld [smem:[#allocation20_spill]] (!%p625_p9)  ;;  %s4586_s8 = sld [smem:[#allocation19_spill]] (!%p625_p9) }
  0x21   : > { %s3139_s28 = sshll.u32 (!%p625_p9), %s3910_s3, 2  ;;  %s4587_s27 = sld [smem:[#allocation12_spill]] (!%p625_p9) }
  0x22   : > { %p702_p11 = scmp.lt.s32.totalorder (!%p625_p9), %s3139_s28, 7  ;;  %s4588_s0 = sld [smem:[#allocation13_spill]] (!%p625_p9) }
  0x23   : > { %v717_v0 = vld [vmem:[%s4581_s24] sm:$0xff] (!%p625_p9)  ;;  %v718_v1 = vld [vmem:[%s4581_s24 + $0x8] sm:$0xff] (!%p625_p9)  ;;  %v719_v6 = vld [vmem:[%s4581_s24 + $0x10] sm:$0xff] (!%p625_p9)  ;;  %s3776_s22 = smov (!%p625_p9), 32   ;;  %s3777_s23 = smov (!%p625_p9), 64  }
  0x24   : > { %v729_v2 = vld [vmem:[%s4581_s24 + $0x60] sm:$0xff] (!%p625_p9)  ;;  %v3517_v4 = vpack.c.bf16 (!%p625_p9), %v718_v1, %v717_v0  ;;  %v730_v5 = vld [vmem:[%s4581_s24 + $0x68] sm:$0xff] (!%p625_p9)  ;;  %v720_v7 = vld [vmem:[%s4581_s24 + $0x18] sm:$0xff] (!%p625_p9) }
  0x25   : > { %v3535_v8 = vpack.c.bf16 %v730_v5, %v729_v2  ;;  %v731_v9 = vld [vmem:[%s4581_s24 + $0x70] sm:$0xff]  ;;  %v732_v10 = vld [vmem:[%s4581_s24 + $0x78] sm:$0xff]  ;;  %v3520_v12 = vpack.c.bf16 %v720_v7, %v719_v6  ;;  %s3969_s26 = scalar_select %p697_p10, %s3910_s3, 1  ;;  %v721_v14 = vld [vmem:[%s4581_s24 + $0x20] sm:$0xff] }
  0x26   : > { %3518 = vmatpush3.bf16.msra.mxu0 %v3517_v4  ;;  %v3538_v13 = vpack.c.bf16 %v732_v10, %v731_v9  ;;  %v722_v15 = vld [vmem:[%s4581_s24 + $0x28] sm:$0xff]  ;;  %v1049_v16 = vld [vmem:[%s4582_s6 + $0x20] sm:$0xff]  ;;  %v723_v21 = vld [vmem:[%s4581_s24 + $0x30] sm:$0xff]  ;;  %s4602_s28 = smov (!%p702_p11, %s3139_s28), 7 }
  0x27   : > { %3536 = vmatpush3.bf16.msra.mxu1 %v3535_v8  ;;  %3519 = vmatprep.subr.bf16.mxu0 %v3772_v3  ;;  %s3138_s1 = sshll.u32 %s3969_s26, 3  ;;  %v1050_v17 = vld [vmem:[%s4582_s6 + $0x28] sm:$0xff]  ;;  %v3523_v19 = vpack.c.bf16 %v722_v15, %v721_v14  ;;  %v724_v22 = vld [vmem:[%s4581_s24 + $0x38] sm:$0xff]  ;;  %v1051_v23 = vld [vmem:[%s4582_s6 + $0x30] sm:$0xff]  ;;  %s704_s30 = scalar_lea.vmem %s4587_s27, %s4602_s28 }
  0x28   : > { %3537 = vmatprep.subr.bf16.mxu1 %v3772_v3  ;;  %s700_s29 = scalar_lea.vmem %s4583_s2, %s3138_s1  ;;  %v3547_v20 = vpack.c.bf16 %v1050_v17, %v1049_v16  ;;  %v1052_v24 = vld [vmem:[%s4582_s6 + $0x38] sm:$0xff]  ;;  %v3526_v25 = vpack.c.bf16 %v724_v22, %v723_v21  ;;  %v725_v27 = vld [vmem:[%s4581_s24 + $0x40] sm:$0xff]  ;;  %v726_v28 = vld [vmem:[%s4581_s24 + $0x48] sm:$0xff]  ;;  %s709_s21 = scalar_lea.vmem %s4588_s0, %s3138_s1 }
  0x29   : > { %v3991_v18 = vld [vmem:[%s700_s29] sm:$0xff]  ;;  %v3550_v26 = vpack.c.bf16 %v1052_v24, %v1051_v23  ;;  %v1058_v30 = vld [vmem:[%s4582_s6 + $0x68] sm:$0xff]  ;;  %v3529_v31 = vpack.c.bf16 %v726_v28, %v725_v27  ;;  %v727_v33 = vld [vmem:[%s4581_s24 + $0x50] sm:$0xff]  ;;  %s4589_s2 = sld [smem:[#allocation14_spill]] }
  0x2a   : > { %3521 = vmatpush3.bf16.msra.mxu0 %v3520_v12  ;;  %v1057_v29 = vld [vmem:[%s4582_s6 + $0x60] sm:$0xff]  ;;  %v728_v34 = vld [vmem:[%s4581_s24 + $0x58] sm:$0xff]  ;;  %v1059_v35 = vld [vmem:[%s4582_s6 + $0x70] sm:$0xff] }
  0x2b   : > { %3539 = vmatpush3.bf16.msra.mxu1 %v3538_v13  ;;  %3522 = vmatprep.subr.bf16.mxu0 %v3772_v3  ;;  %v3559_v32 = vpack.c.bf16 %v1058_v30, %v1057_v29  ;;  %v1060_v36 = vld [vmem:[%s4582_s6 + $0x78] sm:$0xff]  ;;  %v3532_v37 = vpack.c.bf16 %v728_v34, %v727_v33  ;;  %v1045_v39 = vld [vmem:[%s4582_s6] sm:$0xff]  ;;  %v1046_v40 = vld [vmem:[%s4582_s6 + $0x8] sm:$0xff] }
  0x2c   : > { %3546 = vmatprep.subr.bf16.mxu1 %v3772_v3  ;;  %v3562_v38 = vpack.c.bf16 %v1060_v36, %v1059_v35  ;;  %v1373_v41 = vld [vmem:[%s4584_s7 + $0x20] sm:$0xff]  ;;  %v1374_v42 = vld [vmem:[%s4584_s7 + $0x28] sm:$0xff]  ;;  %v3541_v43 = vpack.c.bf16 %v1046_v40, %v1045_v39  ;;  %v1047_v44 = vld [vmem:[%s4582_s6 + $0x10] sm:$0xff] }
  0x2d   : > { %3306 = vmatmul.mubr.msk.f32.vlgmr.msra.gmra.mrb[0].mxu0 %vm761_vm1, %v3991_v18  ;;  %v1048_v45 = vld [vmem:[%s4582_s6 + $0x18] sm:$0xff]  ;;  %v3571_v46 = vpack.c.bf16 %v1374_v42, %v1373_v41  ;;  %v1053_v48 = vld [vmem:[%s4582_s6 + $0x40] sm:$0xff]  ;;  %v1054_v49 = vld [vmem:[%s4582_s6 + $0x48] sm:$0xff] }
  0x2e   : > { %3524 = vmatpush3.bf16.msra.mxu0 %v3523_v19  ;;  %3339 = vmatmul.mubr.msk.f32.vlgmr.msra.gmra.mrb[0].mxu1 %vm761_vm1, %v3991_v18  ;;  %v3544_v47 = vpack.c.bf16 %v1048_v45, %v1047_v44  ;;  %v3553_v50 = vpack.c.bf16 %v1054_v49, %v1053_v48  ;;  %v1055_v51 = vld [vmem:[%s4582_s6 + $0x50] sm:$0xff]  ;;  %v1056_v52 = vld [vmem:[%s4582_s6 + $0x58] sm:$0xff]  ;;  %v1369_v57 = vld [vmem:[%s4584_s7] sm:$0xff] }
  0x2f   : > { %3548 = vmatpush3.bf16.msra.mxu1 %v3547_v20  ;;  %3525 = vmatprep.subr.bf16.mxu0 %v3772_v3  ;;  %v3556_v53 = vpack.c.bf16 %v1056_v52, %v1055_v51  ;;  %v1375_v54 = vld [vmem:[%s4584_s7 + $0x30] sm:$0xff]  ;;  %v1376_v55 = vld [vmem:[%s4584_s7 + $0x38] sm:$0xff]  ;;  %v1370_v58 = vld [vmem:[%s4584_s7 + $0x8] sm:$0xff]  ;;  %s712_s1 = scalar_lea.vmem %s4589_s2, %s3969_s26  ;;  %s4591_s2 = sld [smem:[#allocation21_spill]] }
  0x30   : > { %3549 = vmatprep.subr.bf16.mxu1 %v3772_v3  ;;  %3316 = vmatprep.mubr.msk.f32.mxu0 %vm3773_vm0, %v3774_v11  ;;  %v3574_v56 = vpack.c.bf16 %v1376_v55, %v1375_v54  ;;  %v1381_v59 = vld [vmem:[%s4584_s7 + $0x60] sm:$0xff]  ;;  %v3565_v60 = vpack.c.bf16 %v1370_v58, %v1369_v57  ;;  %v1382_v61 = vld [vmem:[%s4584_s7 + $0x68] sm:$0xff]  ;;  %v1371_v63 = vld [vmem:[%s4584_s7 + $0x10] sm:$0xff] }
  0x31   : > { %3360 = vmatprep.mubr.msk.f32.mxu1 %vm3773_vm0, %v3774_v11  ;;  %v3583_v62 = vpack.c.bf16 %v1382_v61, %v1381_v59  ;;  %v1372_v0 = vld [vmem:[%s4584_s7 + $0x18] sm:$0xff]  ;;  %v1383_v2 = vld [vmem:[%s4584_s7 + $0x70] sm:$0xff]  ;;  %v1377_v6 = vld [vmem:[%s4584_s7 + $0x40] sm:$0xff] }
  0x32   : > { %3527 = vmatpush3.bf16.msra.mxu0 %v3526_v25  ;;  %v3568_v1 = vpack.c.bf16 %v1372_v0, %v1371_v63  ;;  %v1384_v4 = vld [vmem:[%s4584_s7 + $0x78] sm:$0xff]  ;;  %v1378_v7 = vld [vmem:[%s4584_s7 + $0x48] sm:$0xff]  ;;  %v1379_v9 = vld [vmem:[%s4584_s7 + $0x50] sm:$0xff] }
  0x33   : > { %3551 = vmatpush3.bf16.msra.mxu1 %v3550_v26  ;;  %3528 = vmatprep.subr.bf16.mxu0 %v3772_v3  ;;  %v3586_v5 = vpack.c.bf16 %v1384_v4, %v1383_v2  ;;  %v3577_v8 = vpack.c.bf16 %v1378_v7, %v1377_v6  ;;  %v1380_v10 = vld [vmem:[%s4584_s7 + $0x58] sm:$0xff]  ;;  %v3152_v22 = vld [vmem:[%s4585_s9 + $0x3] ss:$0 sm:$0xff]  ;;  %v3149_v30 = vld [vmem:[%s4585_s9] ss:$0 sm:$0xff]  ;;  %s4590_s7 = sld [smem:[#allocation15_spill]] }
  0x34   : > { %3558 = vmatprep.subr.bf16.mxu1 %v3772_v3  ;;  %v3580_v12 = vpack.c.bf16 %v1380_v10, %v1379_v9  ;;  %v3144_v23 = vld [vmem:[%s4586_s8 + $0x3] ss:$0 sm:$0xff]  ;;  %v3141_v33 = vld [vmem:[%s4586_s8] ss:$0 sm:$0xff]  ;;  %v3151_v39 = vld [vmem:[%s4585_s9 + $0x2] ss:$0 sm:$0xff] }
  0x35   : > { %3317 = vmatmul.mubr.msk.f32.vlgmr.msra.gmra.mrb[2].mxu0 %vm761_vm1, %v3991_v18  ;;  %v3143_v42 = vld [vmem:[%s4586_s8 + $0x2] ss:$0 sm:$0xff]  ;;  %v3173_v61 = vld [vmem:[%s704_s30] ss:$0 sm:$0xff]  ;;  %v3174_v2 = vld [vmem:[%s704_s30 + $0x1] ss:$0 sm:$0xff] }
  0x36   : > { %3530 = vmatpush3.bf16.msra.mxu0 %v3529_v31  ;;  %3361 = vmatmul.mubr.msk.f32.vlgmr.msra.gmra.mrb[2].mxu1 %vm761_vm1, %v3991_v18  ;;  %v3150_v31 = vld [vmem:[%s4585_s9 + $0x1] ss:$0 sm:$0xff]  ;;  %v3175_v9 = vld [vmem:[%s704_s30 + $0x2] ss:$0 sm:$0xff] }
  0x37   : > { %3560 = vmatpush3.bf16.msra.mxu1 %v3559_v32  ;;  %3531 = vmatprep.subr.bf16.mxu0 %v3772_v3 }
  0x38   : > { %3561 = vmatprep.subr.bf16.mxu1 %v3772_v3  ;;  %3327 = vmatprep.mubr.msk.f32.mxu0 %vm3773_vm0, %v3774_v11 }
  0x39   : > { %3382 = vmatprep.mubr.msk.f32.mxu1 %vm3773_vm0, %v3774_v11 }
  0x3a   : > { %3533 = vmatpush3.bf16.msra.mxu0 %v3532_v37 }
  0x3b   : > { %3563 = vmatpush3.bf16.msra.mxu1 %v3562_v38  ;;  %3540 = vmatprep.subr.bf16.mxu0 %v3772_v3  ;;  %v3142_v38 = vld [vmem:[%s4586_s8 + $0x1] ss:$0 sm:$0xff]  ;;  %s715_s8 = scalar_lea.vmem %s4590_s7, %s3969_s26 }
  0x3c   : > { %3570 = vmatprep.subr.bf16.mxu1 %v3772_v3 }
  0x3d   : > { %3328 = vmatmul.mubr.msk.f32.vlgmr.msra.gmra.mrb[4].mxu0 %vm761_vm1, %v3991_v18 }
  0x3e   : > { %3542 = vmatpush3.bf16.msra.mxu0 %v3541_v43  ;;  %3383 = vmatmul.mubr.msk.f32.vlgmr.msra.gmra.mrb[4].mxu1 %vm761_vm1, %v3991_v18 }
  0x3f   : > { %3543 = vmatprep.subr.bf16.mxu0 %v3772_v3  ;;  %3349 = vmatprep.mubr.msk.f32.mxu0 %vm3773_vm0, %v3774_v11 }
  0x40   : > { %3572 = vmatpush3.bf16.msra.mxu1 %v3571_v46  ;;  %3404 = vmatprep.mubr.msk.f32.mxu1 %vm3773_vm0, %v3774_v11  ;;  %v3158_v46 = vld [vmem:[%s4542_s10 + $0x1] ss:$0 sm:$0xff] }
  0x41   : > { %3573 = vmatprep.subr.bf16.mxu1 %v3772_v3 }
  0x42   : > { %3545 = vmatpush3.bf16.msra.mxu0 %v3544_v47 }
  0x43   : > { %3552 = vmatprep.subr.bf16.mxu0 %v3772_v3 }
  0x44   : > { %3575 = vmatpush3.bf16.msra.mxu1 %v3574_v56 }
  0x45   : > { %3350 = vmatmul.mubr.msk.f32.vlgmr.msra.gmra.mrb[6].mxu0 %vm761_vm1, %v3991_v18  ;;  %3582 = vmatprep.subr.bf16.mxu1 %v3772_v3 }
  0x46   : > { %3554 = vmatpush3.bf16.msra.mxu0 %v3553_v50  ;;  %3371 = vmatprep.mubr.msk.f32.mxu0 %vm3773_vm0, %v3774_v11  ;;  %v3157_v50 = vld [vmem:[%s4542_s10] ss:$0 sm:$0xff] }
  0x47   : > { %3555 = vmatprep.subr.bf16.mxu0 %v3772_v3  ;;  %3405 = vmatmul.mubr.msk.f32.vlgmr.msra.gmra.mrb[6].mxu1 %vm761_vm1, %v3991_v18 }
  0x48   : > { %3584 = vmatpush3.bf16.msra.mxu1 %v3583_v62  ;;  %3426 = vmatprep.mubr.msk.f32.mxu1 %vm3773_vm0, %v3774_v11 }
  0x49   : > { %3585 = vmatprep.subr.bf16.mxu1 %v3772_v3 }
  0x4a   : > { %3557 = vmatpush3.bf16.msra.mxu0 %v3556_v53 }
  0x4b   : > { %3564 = vmatprep.subr.bf16.mxu0 %v3772_v3 }
  0x4c   : > { %3587 = vmatpush3.bf16.msra.mxu1 %v3586_v5 }
  0x4d   : > { %3372 = vmatmul.mubr.msk.f32.vlgmr.msra.gmra.mrb[8].mxu0 %vm761_vm1, %v3991_v18  ;;  %3444 = vmatprep.subr.mxu1 %v3774_v11 }
  0x4e   : > { %3393 = vmatprep.mubr.msk.f32.mxu0 %vm3773_vm0, %v3774_v11  ;;  %3566 = vmatpush3.bf16.msra.mxu0 %v3565_v60 }
  0x4f   : > { %3567 = vmatprep.subr.bf16.mxu0 %v3772_v3  ;;  %3427 = vmatmul.mubr.msk.f32.vlgmr.msra.gmra.mrb[8].mxu1 %vm761_vm1, %v3991_v18 }
  0x50   : > { %3446 = vmatprep.mubr.msk.f32.mxu1 %vm3773_vm0, %v3774_v11 }
  0x52   : > { %3569 = vmatpush3.bf16.msra.mxu0 %v3568_v1 }
  0x53   : > { %3576 = vmatprep.subr.bf16.mxu0 %v3772_v3 }
  0x55   : > { %3394 = vmatmul.mubr.msk.f32.vlgmr.msra.gmra.mrb[10].mxu0 %vm761_vm1, %v3991_v18 }
  0x56   : > { %3578 = vmatpush3.bf16.msra.mxu0 %v3577_v8  ;;  %3415 = vmatprep.mubr.msk.f32.mxu0 %vm3773_vm0, %v3774_v11 }
  0x57   : > { %3579 = vmatprep.subr.bf16.mxu0 %v3772_v3 }
  0x5a   : > { %3581 = vmatpush3.bf16.msra.mxu0 %v3580_v12 }
  0x5b   : > { %3429 = vmatprep.subr.mxu0 %v3774_v11 }
  0x5d   : > { %3416 = vmatmul.mubr.msk.f32.vlgmr.msra.gmra.mrb[12].mxu0 %vm761_vm1, %v3991_v18 }
  0x5e   : > { %3431 = vmatprep.mubr.msk.f32.mxu0 %vm3773_vm0, %v3774_v11 }
 0x100   : > { %v831_v13 = vpop.f32.mrb[0].mxu0 }
 0x101   : > { %v3307_v14 = vpop.f32.mrb[1].mxu0  ;;  %v1041_v15 = vpop.f32.mrb[0].mxu1  ;;  %v832_v37 = vadd.f32 %v3141_v33, %v831_v13 }
 0x102   : > { %v3340_v16 = vpop.f32.mrb[1].mxu1  ;;  %v1042_v29 = vadd.f32 %v3144_v23, %v1041_v15  ;;  %v3176_v15 = vld [vmem:[%s704_s30 + $0x3] ss:$0 sm:$0xff] }
 0x108   : > { %v901_v17 = vpop.f32.mrb[2].mxu0 }
 0x109   : > { %v3318_v19 = vpop.f32.mrb[3].mxu0  ;;  %v1225_v20 = vpop.f32.mrb[2].mxu1  ;;  %v902_v40 = vadd.f32 %v3142_v38, %v901_v17 }
 0x10a   : > { %v3362_v21 = vpop.f32.mrb[3].mxu1  ;;  %v1226_v36 = vadd.f32 %v3150_v31, %v1225_v20 }
 0x110   : > { %v971_v24 = vpop.f32.mrb[4].mxu0 }
 0x111   : > { %v3329_v25 = vpop.f32.mrb[5].mxu0  ;;  %v1365_v26 = vpop.f32.mrb[4].mxu1  ;;  %v972_v45 = vadd.f32 %v3143_v42, %v971_v24 }
 0x112   : > { %v1366_v27 = vadd.f32 %v3152_v22, %v1365_v26  ;;  %v3384_v28 = vpop.f32.mrb[5].mxu1 }
 0x114   : > { %3445 = vmatpush3.xpose.msk.msra.mxu1 %vm1693_vm2, %v1366_v27 }
 0x115   : > { %3454 = vmatprep.subr.mxu1 %v3774_v11 }
 0x117   : > { %3447 = vmatmul.mubr.msk.f32.vlgmr.msra.gmra.mrb[10].mxu1 %vm1693_vm2, %v1042_v29 }
 0x118   : > { %v1155_v32 = vpop.f32.mrb[6].mxu0  ;;  %3456 = vmatprep.mubr.msk.f32.mxu1 %vm3773_vm0, %v3774_v11 }
 0x119   : > { %v1156_v34 = vadd.f32 %v3149_v30, %v1155_v32  ;;  %v3351_v35 = vpop.f32.mrb[7].mxu0 }
 0x11a   : > { %v1549_v47 = vpop.f32.mrb[6].mxu1 }
 0x11b   : > { %3430 = vmatpush3.xpose.msk.msra.mxu0 %vm1693_vm2, %v1156_v34  ;;  %v1550_v48 = vadd.f32 %v3158_v46, %v1549_v47  ;;  %v3406_v49 = vpop.f32.mrb[7].mxu1 }
 0x11c   : > { %3434 = vmatprep.subr.mxu0 %v3774_v11  ;;  %v3160_v49 = vld [vmem:[%s4542_s10 + $0x3] ss:$0 sm:$0xff] }
 0x11d   : > { %3455 = vmatpush3.msra.mxu1 %v1550_v48 }
 0x11e   : > { %3432 = vmatmul.mubr.msk.f32.vlgmr.msra.gmra.mrb[14].mxu0 %vm1693_vm2, %v832_v37  ;;  %3464 = vmatprep.subr.mxu1 %v3774_v11 }
 0x11f   : > { %3435 = vmatpush3.xpose.msk.msra.mxu0 %vm1693_vm2, %v1226_v36  ;;  %3436 = vmatprep.mubr.msk.f32.mxu0 %vm3773_vm0, %v3774_v11 }
 0x120   : > { %v1295_v41 = vpop.f32.mrb[8].mxu0  ;;  %3439 = vmatprep.subr.mxu0 %v3774_v11 }
 0x121   : > { %v1296_v43 = vadd.f32 %v3151_v39, %v1295_v41  ;;  %v3373_v44 = vpop.f32.mrb[9].mxu0 }
 0x122   : > { %3437 = vmatmul.mubr.msk.f32.vlgmr.msra.gmra.mrb[16].mxu0 %vm1693_vm2, %v902_v40  ;;  %v4222_v54 = vpop.f32.mrb[8].mxu1  ;;  %v3159_v44 = vld [vmem:[%s4542_s10 + $0x2] ss:$0 sm:$0xff] }
 0x123   : > { %3440 = vmatpush3.xpose.msk.msra.mxu0 %vm1693_vm2, %v1296_v43  ;;  %3441 = vmatprep.mubr.msk.f32.mxu0 %vm3773_vm0, %v3774_v11  ;;  %v3428_v55 = vpop.f32.mrb[9].mxu1 }
 0x124   : > { %3449 = vmatprep.subr.mxu0 %v3774_v11 }
 0x126   : > { %3442 = vmatmul.mubr.msk.f32.vlgmr.msra.gmra.mrb[18].mxu0 %vm1693_vm2, %v972_v45 }
 0x127   : > { %3451 = vmatprep.mubr.msk.f32.mxu0 %vm3773_vm0, %v3774_v11 }
 0x128   : > { %v1479_v51 = vpop.f32.mrb[10].mxu0 }
 0x129   : > { %v1480_v52 = vadd.f32 %v3157_v50, %v1479_v51  ;;  %v3395_v53 = vpop.f32.mrb[11].mxu0 }
 0x12b   : > { %3450 = vmatpush3.msra.mxu0 %v1480_v52  ;;  %v1690_v52 = vadd.f32 %v3160_v49, %v4222_v54  ;;  %v2370_v54 = vld [vmem:[%s4543_s11] sm:$0xff] }
 0x12c   : > { %3459 = vmatprep.subr.mxu0 %v3774_v11 }
 0x130   : > { %v4225_v56 = vpop.f32.mrb[12].mxu0 }
 0x131   : > { %v3417_v57 = vpop.f32.mrb[13].mxu0  ;;  %v1620_v48 = vadd.f32 %v3159_v44, %v4225_v56 }
 0x1ea   : > { %v1994_v58 = vpop.f32.mrb[10].mxu1 }
 0x1eb   : > { %v3448_v59 = vpop.f32.mrb[11].mxu1  ;;  %v2001_v10 = vmul.f32 0.35355338, %v1994_v58  ;;  %v2371_v58 = vld [vmem:[%s4543_s11 + $0x8] sm:$0xff] }
 0x1ec   : > { %v2372_v59 = vld [vmem:[%s4543_s11 + $0x10] sm:$0xff] }
 0x1ed   : > { %v2033_v19 = vadd.f32 %v3176_v15, %v2001_v10 }
 0x1ef   : > { %v2043_v20 = vsel %vm1693_vm2, %v2033_v19, -inf }
 0x1f1   : > { %v1766_v60 = vpop.f32.mrb[14].mxu0 }
 0x1f2   : > { %v1998_v62 = vmul.f32 0.35355338, %v1766_v60  ;;  %v3433_v63 = vpop.f32.mrb[15].mxu0 }
 0x1f4   : > { %v2030_v0 = vadd.f32 %v3173_v61, %v1998_v62  ;;  %v2373_v62 = vld [vmem:[%s4543_s11 + $0x18] sm:$0xff] }
 0x1f5   : > { %v1842_v1 = vpop.f32.mrb[16].mxu0 }
 0x1f6   : > { %v1999_v4 = vmul.f32 0.35355338, %v1842_v1  ;;  %v3438_v5 = vpop.f32.mrb[17].mxu0  ;;  %v2034_v6 = vsel %vm1693_vm2, %v2030_v0, -inf }
 0x1f7   : > { %2035 = vmax.xlane.f32.xlu0 %v2034_v6 }
 0x1f8   : > { %v2031_v7 = vadd.f32 %v3174_v2, %v1999_v4 }
 0x1f9   : > { %v1918_v8 = vpop.f32.mrb[18].mxu0 }
 0x1fa   : > { %v2000_v12 = vmul.f32 0.35355338, %v1918_v8  ;;  %v3443_v13 = vpop.f32.mrb[19].mxu0  ;;  %v2037_v14 = vsel %vm1693_vm2, %v2031_v7, -inf }
 0x1fb   : > { %2038 = vmax.xlane.f32.xlu0 %v2037_v14 }
 0x1fc   : > { %v2032_v16 = vadd.f32 %v3175_v9, %v2000_v12 }
 0x1fe   : > { %v2040_v17 = vsel %vm1693_vm2, %v2032_v16, -inf }
 0x1ff   : > { %2041 = vmax.xlane.f32.xlu1 %v2040_v17 }
 0x203   : > { %2044 = vmax.xlane.f32.xlu1 %v2043_v20 }
 0x284   : > { %v2036_v21 = vpop.xlane.xlu0 %2035 }
 0x285   : > { %v2046_v22 = vsub.f32 %v2030_v0, %v2036_v21 }
 0x287   : > { %v2050_v23 = vmul.f32 1.442695, %v2046_v22  ;;  %v3775_v22 = vmov 0  }
 0x288   : > { %v2039_v24 = vpop.xlane.xlu0 %2038  ;;  %3687 = vset.pattern.permute.xlu0 %v3775_v22  ;;  %v2877_v22 = vld [vmem:[%s4549_s17 + $0x40] sm:$0xff] }
 0x289   : > { %3688 = vpow2.f32 %v2050_v23  ;;  %v2047_v25 = vsub.f32 %v2031_v7, %v2039_v24  ;;  %v2708_v23 = vld [vmem:[%s709_s21] sm:$0xff]  ;;  %s3197_s21 = sshll.u32 %s3910_s3, 7 }
 0x28a   : > { %s4489_s28 = scalar_lea.hbm %s4591_s2, %s3197_s21 }
 0x28b   : > { %v2052_v26 = vmul.f32 1.442695, %v2047_v25 }
 0x28c   : > { %v2042_v27 = vpop.xlane.xlu1 %2041 }
 0x28d   : > { %3690 = vpow2.f32 %v2052_v26  ;;  %v2048_v28 = vsub.f32 %v2032_v16, %v2042_v27 }
 0x28f   : > { %v2054_v29 = vmul.f32 1.442695, %v2048_v28 }
 0x290   : > { %v2045_v30 = vpop.xlane.xlu1 %2044 }
 0x291   : > { %3692 = vpow2.f32 %v2054_v29  ;;  %v2049_v31 = vsub.f32 %v2033_v19, %v2045_v30  ;;  %v2763_v29 = vld [vmem:[%s4547_s15 + $0x8] sm:$0xff]  ;;  %v2764_v30 = vld [vmem:[%s4547_s15 + $0x10] sm:$0xff] }
 0x293   : > { %v3689_v32 = vpop.eup %3688  ;;  %v2056_v33 = vmul.f32 1.442695, %v2049_v31 }
 0x294   : > { %v2058_v34 = vsel %vm1693_vm2, %v3689_v32, 0.0 }
 0x295   : > { %3694 = vpow2.f32 %v2056_v33  ;;  %2059 = vadd.xlane.f32.xlu0 %v2058_v34  ;;  %v2766_v34 = vld [vmem:[%s4547_s15 + $0x20] sm:$0xff] }
 0x297   : > { %v3691_v35 = vpop.eup %3690 }
 0x298   : > { %v2061_v36 = vsel %vm1693_vm2, %v3691_v35, 0.0 }
 0x299   : > { %2062 = vadd.xlane.f32.xlu1 %v2061_v36 }
 0x29b   : > { %v3693_v37 = vpop.eup %3692 }
 0x29c   : > { %v2064_v38 = vsel %vm1693_vm2, %v3693_v37, 0.0 }
 0x29d   : > { %2065 = vadd.xlane.f32.xlu0 %v2064_v38  ;;  %v2769_v38 = vld [vmem:[%s4547_s15 + $0x38] sm:$0xff] }
 0x29f   : > { %v3695_v39 = vpop.eup %3694 }
 0x2a0   : > { %v2067_v40 = vsel %vm1693_vm2, %v3695_v39, 0.0 }
 0x2a1   : > { %2068 = vadd.xlane.f32.xlu1 %v2067_v40  ;;  %v2770_v40 = vld [vmem:[%s4547_s15 + $0x40] sm:$0xff] }
 0x322   : > { %v2060_v41 = vpop.xlane.xlu0 %2059 }
 0x323   : > { %3696 = vrcp.f32 %v2060_v41  ;;  %v2771_v41 = vld [vmem:[%s4547_s15 + $0x48] sm:$0xff] }
 0x326   : > { %v2063_v42 = vpop.xlane.xlu1 %2062 }
 0x327   : > { %3698 = vrcp.f32 %v2063_v42  ;;  %v3601_v42 = vpack.c.bf16 %v2771_v41, %v2770_v40  ;;  %v2890_v40 = vld [vmem:[%s4549_s17 + $0xa8] sm:$0xff] }
 0x32a   : > { %v2066_v43 = vpop.xlane.xlu0 %2065 }
 0x32b   : > { %3700 = vrcp.f32 %v2066_v43 }
 0x32d   : > { %v3697_v45 = vpop.eup %3696 }
 0x32e   : > { %v2074_v46 = vmul.f32 %v3697_v45, %v3689_v32  ;;  %v2069_v47 = vpop.xlane.xlu1 %2068  ;;  %v2765_v32 = vld [vmem:[%s4547_s15 + $0x18] sm:$0xff] }
 0x32f   : > { %3702 = vrcp.f32 %v2069_v47  ;;  %v3592_v33 = vpack.c.bf16 %v2765_v32, %v2764_v30  ;;  %v2772_v47 = vld [vmem:[%s4547_s15 + $0x50] sm:$0xff] }
 0x330   : > { %3452 = vmatmul.mubr.msk.f32.vlgmr.msra.gmra.mrb[20].mxu0 %vm1693_vm2, %v2074_v46  ;;  %v2715_v46 = vlaneseq  ;;  %v2883_v30 = vld [vmem:[%s4549_s17 + $0x70] sm:$0xff] }
 0x331   : > { %v3699_v50 = vpop.eup %3698  ;;  %3460 = vmatpush3.msra.mxu0 %v1620_v48  ;;  %3461 = vmatprep.mubr.msk.f32.mxu0 %vm3773_vm0, %v3774_v11  ;;  %v2773_v48 = vld [vmem:[%s4547_s15 + $0x58] sm:$0xff] }
 0x332   : > { %v2075_v51 = vmul.f32 %v3699_v50, %v3691_v35  ;;  %3469 = vmatprep.subr.mxu0 %v3774_v11  ;;  %v2767_v35 = vld [vmem:[%s4547_s15 + $0x28] sm:$0xff]  ;;  %v2716_v49 = vshrl.u32 %v2715_v46, 7  ;;  %v3604_v50 = vpack.c.bf16 %v2773_v48, %v2772_v47 }
 0x333   : > { %v3595_v36 = vpack.c.bf16 %v2767_v35, %v2766_v34  ;;  %v2886_v34 = vld [vmem:[%s4549_s17 + $0x88] sm:$0xff] }
 0x334   : > { %3457 = vmatmul.mubr.msk.f32.vlgmr.msra.gmra.mrb[12].mxu1 %vm1693_vm2, %v2075_v51 }
 0x335   : > { %v3701_v53 = vpop.eup %3700  ;;  %3465 = vmatpush3.msra.mxu1 %v1690_v52  ;;  %3466 = vmatprep.mubr.msk.f32.mxu1 %vm3773_vm0, %v3774_v11  ;;  %v3186_v52 = vld [vmem:[%s4545_s13] ss:$0 sm:$0xff] }
 0x336   : > { %v2076_v55 = vmul.f32 %v3701_v53, %v3693_v37  ;;  %3474 = vmatprep.subr.mxu1 %v3774_v11  ;;  %v2768_v37 = vld [vmem:[%s4547_s15 + $0x30] sm:$0xff] }
 0x338   : > { %3462 = vmatmul.mubr.msk.f32.vlgmr.msra.gmra.mrb[22].mxu0 %vm1693_vm2, %v2076_v55  ;;  %v2721_v55 = vand.u32 7, %v2716_v49 }
 0x339   : > { %v3703_v56 = vpop.eup %3702  ;;  %3471 = vmatprep.mubr.msk.f32.mxu0 %vm3773_vm0, %v3774_v11  ;;  %3470 = vmatpush3.msra.mxu0 %v2370_v54 }
 0x33a   : > { %v2077_v57 = vmul.f32 %v3703_v56, %v3695_v39  ;;  %3479 = vmatprep.subr.mxu0 %v3774_v11  ;;  %v3598_v39 = vpack.c.bf16 %v2769_v38, %v2768_v37  ;;  %v3187_v56 = vld [vmem:[%s4546_s14] ss:$0 sm:$0xff]  ;;  %v2888_v37 = vld [vmem:[%s4549_s17 + $0x98] sm:$0xff] }
 0x33c   : > { %3467 = vmatmul.mubr.msk.f32.vlgmr.msra.gmra.mrb[14].mxu1 %vm1693_vm2, %v2077_v57 }
 0x33d   : > { %3476 = vmatprep.mubr.msk.f32.mxu1 %vm3773_vm0, %v3774_v11  ;;  %3475 = vmatpush3.msra.mxu1 %v2371_v58 }
 0x33e   : > { %3484 = vmatprep.subr.mxu1 %v3774_v11 }
 0x403   : > { %v2147_v60 = vpop.f32.mrb[20].mxu0 }
 0x404   : > { %v3453_v61 = vpop.f32.mrb[21].mxu0  ;;  %3472 = vmatmul.mubr.msk.f32.vlgmr.msra.gmra.mrb[24].mxu0 %vm1693_vm2, %v2147_v60 }
 0x405   : > { %3480 = vmatpush3.msra.mxu0 %v2372_v59  ;;  %3481 = vmatprep.mubr.msk.f32.mxu0 %vm3773_vm0, %v3774_v11  ;;  %v4347_v59 = vadd.s32 1, %v2721_v55 }
 0x406   : > { %3588 = vmatprep.subr.bf16.mxu0 %v3772_v3 }
 0x407   : > { %v2220_v63 = vpop.f32.mrb[12].mxu1  ;;  %vm2747_vm4 = vcmp.lt.s32.totalorder %v4347_v59, 8 }
 0x408   : > { %v3458_v0 = vpop.f32.mrb[13].mxu1  ;;  %3477 = vmatmul.mubr.msk.f32.vlgmr.msra.gmra.mrb[16].mxu1 %vm1693_vm2, %v2220_v63 }
 0x409   : > { %3485 = vmatpush3.msra.mxu1 %v2373_v62  ;;  %3486 = vmatprep.mubr.msk.f32.mxu1 %vm3773_vm0, %v3774_v11  ;;  %v4359_v0 = vadd.s32 4294967295, %v2721_v55 }
 0x40a   : > { %3606 = vmatprep.subr.bf16.mxu1 %v3772_v3 }
 0x40b   : > { %v2293_v1 = vpop.f32.mrb[22].mxu0  ;;  %vm2735_vm6 = vcmp.ge.s32.totalorder %v4359_v0, 0 }
 0x40c   : > { %v3463_v2 = vpop.f32.mrb[23].mxu0  ;;  %3482 = vmatmul.mubr.msk.f32.vlgmr.msra.gmra.mrb[26].mxu0 %vm1693_vm2, %v2293_v1 }
 0x40d   : > { %3513 = vmatprep.mubr.msk.f32.mxu0 %vm3773_vm0, %v3774_v11  ;;  %v3185_v11 = vld [vmem:[%s4544_s12] ss:$0 sm:$0xff] }
 0x40f   : > { %v2366_v4 = vpop.f32.mrb[14].mxu1 }
 0x410   : > { %v3468_v5 = vpop.f32.mrb[15].mxu1  ;;  %3487 = vmatmul.mubr.msk.f32.vlgmr.msra.gmra.mrb[18].mxu1 %vm1693_vm2, %v2366_v4 }
 0x4d7   : > { %v2443_v6 = vpop.f32.mrb[24].mxu0 }
 0x4d8   : > { %v3473_v7 = vpop.f32.mrb[25].mxu0 }
 0x4db   : > { %v2516_v8 = vpop.f32.mrb[16].mxu1 }
 0x4dc   : > { %v2666_v9 = vadd.f32 %v2516_v8, %v2443_v6  ;;  %v3478_v10 = vpop.f32.mrb[17].mxu1 }
 0x4dd   : > { %v2870_v10 = vld [vmem:[%s4549_s17 + $0x8] sm:$0xff] }
 0x4df   : > { %v2589_v12 = vpop.f32.mrb[26].mxu0 }
 0x4e0   : > { %v2667_v13 = vadd.f32 %v2666_v9, %v2589_v12  ;;  %v3483_v14 = vpop.f32.mrb[27].mxu0  ;;  %v2869_v9 = vld [vmem:[%s4549_s17] sm:$0xff]  ;;  %v2871_v12 = vld [vmem:[%s4549_s17 + $0x10] sm:$0xff] }
 0x4e1   : > { %v2872_v14 = vld [vmem:[%s4549_s17 + $0x18] sm:$0xff] }
 0x4e3   : > { %v2662_v15 = vpop.f32.mrb[18].mxu1 }
 0x4e4   : > { %v2668_v16 = vadd.f32 %v2667_v13, %v2662_v15  ;;  %v3488_v17 = vpop.f32.mrb[19].mxu1  ;;  %v3607_v13 = vpack.c.bf16 %v2870_v10, %v2869_v9  ;;  %v3610_v15 = vpack.c.bf16 %v2872_v14, %v2871_v12 }
 0x4e5   : > { %v2874_v17 = vld [vmem:[%s4549_s17 + $0x28] sm:$0xff] }
 0x4e6   : > { %v2669_v19 = vadd.f32 %v2668_v16, %v3991_v18  ;;  %v2762_v18 = vld [vmem:[%s4547_s15] sm:$0xff]  ;;  %3608 = vmatpush1.bf16.msra.mxu1 %v3607_v13 }
 0x4e7   : > { %v3589_v31 = vpack.c.bf16 %v2763_v29, %v2762_v18  ;;  %3609 = vmatprep.subr.bf16.mxu1 %v3772_v3  ;;  %v2873_v16 = vld [vmem:[%s4549_s17 + $0x20] sm:$0xff]  ;;  %v2882_v18 = vld [vmem:[%s4549_s17 + $0x68] sm:$0xff] }
 0x4e8   : > { %v2677_v20 = vadd.f32 %v3185_v11, %v2669_v19  ;;  %v3613_v11 = vpack.c.bf16 %v2874_v17, %v2873_v16  ;;  %v2875_v19 = vld [vmem:[%s4549_s17 + $0x30] sm:$0xff]  ;;  %v3193_v13 = vld [vmem:[%s4552_s20] ss:$0 sm:$0xff] }
 0x4e9   : > { %3590 = vmatpush3.bf16.msra.mxu0 %v3589_v31  ;;  %v2884_v31 = vld [vmem:[%s4549_s17 + $0x78] sm:$0xff]  ;;  %v3195_v17 = vld [vmem:[%s715_s8] ss:$0 sm:$0xff]  ;;  %s3778_s8 = smov [#allocation2]  }
 0x4ea   : > { %v2680_v21 = vsel %vm761_vm1, %v2677_v20, 0.0  ;;  %3591 = vmatprep.subr.bf16.mxu0 %v3772_v3  ;;  %3611 = vmatpush1.bf16.msra.mxu1 %v3610_v15  ;;  %v3628_v32 = vpack.c.bf16 %v2884_v31, %v2883_v30  ;;  %v3194_v15 = vld [vmem:[%s712_s1] ss:$0 sm:$0xff]  ;;  %s3712_s3 = sshll.u32 %s3778_s8, 4  ;;  %s3713_s3 = int_to_ptr.vmem [resolvable:$false] %s3712_s3 }
 0x4eb   : > { %2681 = vadd.xlane.f32.xlu0 %v2680_v21  ;;  %3612 = vmatprep.subr.bf16.mxu1 %v3772_v3  ;;  %s3714_s26 = scalar_lea.vmem %s3713_s3, 256 }
 0x4ed   : > { %3593 = vmatpush3.bf16.msra.mxu0 %v3592_v33  ;;  %v2885_v33 = vld [vmem:[%s4549_s17 + $0x80] sm:$0xff] }
 0x4ee   : > { %3594 = vmatprep.subr.bf16.mxu0 %v3772_v3  ;;  %3614 = vmatpush1.bf16.msra.mxu1 %v3613_v11  ;;  %v3631_v35 = vpack.c.bf16 %v2886_v34, %v2885_v33 }
 0x4ef   : > { %3615 = vmatprep.subr.bf16.mxu1 %v3772_v3 }
 0x4f1   : > { %3596 = vmatpush3.bf16.msra.mxu0 %v3595_v36  ;;  %v2887_v36 = vld [vmem:[%s4549_s17 + $0x90] sm:$0xff] }
 0x4f2   : > { %3597 = vmatprep.subr.bf16.mxu0 %v3772_v3  ;;  %v3634_v38 = vpack.c.bf16 %v2888_v37, %v2887_v36 }
 0x4f5   : > { %3599 = vmatpush3.bf16.msra.mxu0 %v3598_v39  ;;  %v2889_v39 = vld [vmem:[%s4549_s17 + $0xa0] sm:$0xff] }
 0x4f6   : > { %3600 = vmatprep.subr.bf16.mxu0 %v3772_v3  ;;  %v3637_v41 = vpack.c.bf16 %v2890_v40, %v2889_v39 }
 0x4f9   : > { %3602 = vmatpush3.bf16.msra.mxu0 %v3601_v42  ;;  %v2891_v42 = vld [vmem:[%s4549_s17 + $0xb0] sm:$0xff] }
 0x4fa   : > { %3603 = vmatprep.subr.bf16.mxu0 %v3772_v3 }
 0x4fd   : > { %3605 = vmatpush3.bf16.msra.mxu0 %v3604_v50 }
 0x501   : > { %2711 = vperm.xlu0 %3687, %v2708_v23   ;;  %v2878_v23 = vld [vmem:[%s4549_s17 + $0x48] sm:$0xff] }
 0x578   : > { %v2682_v24 = vpop.xlane.xlu0 %2681 }
 0x579   : > { %v2684_v25 = vmul.f32 0.03125, %v2682_v24  ;;  %v3619_v24 = vpack.c.bf16 %v2878_v23, %v2877_v22 }
 0x57b   : > { %v2685_v26 = vsub.f32 %v2677_v20, %v2684_v25  ;;  %v2876_v20 = vld [vmem:[%s4549_s17 + $0x38] sm:$0xff]  ;;  %v2879_v25 = vld [vmem:[%s4549_s17 + $0x50] sm:$0xff] }
 0x57c   : > { %v3616_v21 = vpack.c.bf16 %v2876_v20, %v2875_v19 }
 0x57d   : > { %v2686_v27 = vmul.f32 %v2685_v26, %v2685_v26 }
 0x57e   : > { %3617 = vmatpush1.bf16.msra.mxu1 %v3616_v21 }
 0x57f   : > { %v2687_v28 = vsel %vm761_vm1, %v2686_v27, 0.0  ;;  %3618 = vmatprep.subr.bf16.mxu1 %v3772_v3 }
 0x580   : > { %2688 = vadd.xlane.f32.xlu1 %v2687_v28  ;;  %v4345_v54 = vpop.permute.xlu0 %2711  ;;  %v2881_v28 = vld [vmem:[%s4549_s17 + $0x60] sm:$0xff] }
 0x581   : > { %v3625_v29 = vpack.c.bf16 %v2882_v18, %v2881_v28 }
 0x582   : > { %3620 = vmatpush1.bf16.msra.mxu1 %v3619_v24 }
 0x583   : > { %3621 = vmatprep.subr.bf16.mxu1 %v3772_v3 }
 0x60d   : > { %v2689_v43 = vpop.xlane.xlu1 %2688 }
 0x60e   : > { %v2690_v44 = vmul.f32 0.03125, %v2689_v43  ;;  %v2892_v43 = vld [vmem:[%s4549_s17 + $0xb8] sm:$0xff] }
 0x610   : > { %v2691_v45 = vadd.f32 1e-05, %v2690_v44  ;;  %v3640_v44 = vpack.c.bf16 %v2892_v43, %v2891_v42 }
 0x612   : > { %3704 = vrsqrt.f32 %v2691_v45  ;;  %v3188_v45 = vld [vmem:[%s4548_s16] ss:$0 sm:$0xff] }
 0x61c   : > { %v3705_v51 = vpop.eup %3704 }
 0x61d   : > { %v2693_v53 = vmul.f32 %v3705_v51, %v2685_v26  ;;  %v2880_v26 = vld [vmem:[%s4549_s17 + $0x58] sm:$0xff] }
 0x61e   : > { %v3622_v27 = vpack.c.bf16 %v2880_v26, %v2879_v25 }
 0x61f   : > { %v2700_v57 = vmul.f32 %v3186_v52, %v2693_v53 }
 0x620   : > { %3623 = vmatpush1.bf16.msra.mxu1 %v3622_v27 }
 0x621   : > { %v2707_v58 = vadd.f32 %v3187_v56, %v2700_v57  ;;  %3624 = vmatprep.subr.bf16.mxu1 %v3772_v3 }
 0x623   : > { %v4350_v60 = vmul.f32 %v4345_v54, %v2707_v58  ;;  %v3190_v58 = vld [vmem:[%s4550_s18] ss:$0 sm:$0xff] }
 0x624   : > { %3626 = vmatpush1.bf16.msra.mxu1 %v3625_v29 }
 0x625   : > { %2752 = vrot.lane.b32.xlu1 %v4350_v60, %s3776_s22  ;;  %v2741_v61 = vrot.slane %v4350_v60, 1  ;;  %v2730_v1 = vrot.slane %v4350_v60, 7  ;;  %3627 = vmatprep.subr.bf16.mxu1 %v3772_v3  ;;  %s4592_s22 = smov %s4591_s2 }
 0x627   : > { %v2744_v62 = vsel %vm2743_vm3, %v2741_v61, 0.0  ;;  %v2733_v4 = vsel %vm2732_vm5, 0.0, %v2730_v1 }
 0x628   : > { %v2751_v63 = vsel %vm2747_vm4, %v2744_v62, 0.0  ;;  %v2740_v5 = vsel %vm2735_vm6, %v2733_v4, 0.0  ;;  %3629 = vmatpush1.bf16.msra.mxu1 %v3628_v32 }
 0x629   : > { %2756 = vrot.lane.b32.xlu1 %v2751_v63, %s3777_s23  ;;  %3630 = vmatprep.subr.bf16.mxu1 %v3772_v3 }
 0x62c   : > { %3632 = vmatpush1.bf16.msra.mxu1 %v3631_v35 }
 0x62d   : > { %3633 = vmatprep.subr.bf16.mxu1 %v3772_v3 }
 0x630   : > { %3635 = vmatpush1.bf16.msra.mxu1 %v3634_v38 }
 0x631   : > { %3636 = vmatprep.subr.bf16.mxu1 %v3772_v3 }
 0x634   : > { %3638 = vmatpush1.bf16.msra.mxu1 %v3637_v41 }
 0x635   : > { %3639 = vmatprep.subr.bf16.mxu1 %v3772_v3 }
 0x638   : > { %3641 = vmatpush1.bf16.msra.mxu1 %v3640_v44 }
 0x697   : > { %v2753_v2 = vpop.permute.xlu1 %2752 }
 0x698   : > { %v2759_v6 = vsel %vm761_vm1, %v2740_v5, %v2753_v2 }
 0x69b   : > { %v2757_v7 = vpop.permute.xlu1 %2756 }
 0x69c   : > { %v2761_v8 = vsel %vm2760_vm7, %v2759_v6, %v2757_v7 }
 0x69d   : > { %3514 = vmatmul.mubr.msk.f32.vlgmr.msra.gmra.mrb[28].mxu0 %vm2781_vm8, %v2761_v8 }
 0x770   : > { %v2851_v46 = vpop.f32.mrb[28].mxu0 }
 0x771   : > { %v2852_v47 = vadd.f32 %v3188_v45, %v2851_v46  ;;  %v3515_v48 = vpop.f32.mrb[29].mxu0 }
 0x773   : > { %v2855_v49 = vmax.f32 %v2852_v47, 0.0 }
 0x775   : > { %v2861_v50 = vrot.slane %v2855_v49, 1  ;;  %2865 = vrot.lane.b32.xlu1 %v2855_v49, %s3777_s23  ;;  %v2857_v3 = vrot.slane %v2855_v49, 7  ;;  %s694_s23 = sand.u32 1, %s3762_s25  }
 0x776   : > { %s3137_s29 = sshll.u32 %s694_s23, 3  ;;  %s3022_s6 = scalar_lea.sflag [#allocation3], %s694_s23 }
 0x777   : > { %v2863_v51 = vsel %vm2743_vm3, %v2861_v50, 0.0  ;;  %v2859_v53 = vsel %vm2732_vm5, 0.0, %v2857_v3  ;;  %s696_s27 = scalar_lea.vmem [#allocation2], %s3137_s29 }
 0x778   : > { %v2864_v52 = vsel %vm2747_vm4, %v2863_v51, 0.0  ;;  %v2860_v56 = vsel %vm2735_vm6, %v2859_v53, 0.0  ;;  %s3035_s9 = sshll.u32 %s696_s27, 4  ;;  %s4491_s9 = int_to_ptr.vmem [resolvable:$true] %s3035_s9 }
 0x779   : > { %3191 = vmatprep.mubr.msk.f32.mxu1 %vm2760_vm7, %v2864_v52  ;;  %s3708_s7 = scalar_lea.vmem %s4491_s9, 128  ;;  %p3715_p1 = scmp.lt.s32.totalorder %s4491_s9, %s3713_s3 }
 0x77a   : > { %p3709_p12 = scmp.ne.s32.totalorder %s4491_s9, %s3708_s7  ;;  %p3716_p2 = scmp.lt.s32.totalorder %s3714_s26, %s3708_s7 }
 0x77c   : > { %p3710_p13 = pnand %p3709_p12, %p3927_p5  ;;  %p3717_p3 = por %p3716_p2, %p3715_p1 }
 0x77e   : > { %p3711_p0 = pneg %p3710_p13 }
 0x780   : > { %p3718_p4 = pnand %p3717_p3, %p3711_p0 }
 0x7e7   : > { %v2866_v55 = vpop.permute.xlu1 %2865 }
 0x7e8   : > { %v2868_v57 = vsel %vm2760_vm7, %v2860_v56, %v2866_v55 }
 0x7e9   : > { %2968 = vmatmul.mubr.f32.vlgmr.msra.gmra.mrb[20].mxu1 %v2868_v57 }
 0x8bc   : > { %v2969_v61 = vpop.f32.mrb[20].mxu1 }
 0x8bd   : > { %v2970_v59 = vadd.f32 %v3190_v58, %v2969_v61  ;;  %v2971_v62 = vpop.f32.mrb[21].mxu1 }
 0x8bf   : > { %v2973_v63 = vadd.f32 %v2970_v59, %v4350_v60  ;;  %v3192_v60 = vld [vmem:[%s4551_s19] ss:$0 sm:$0xff] }
 0x8c1   : > { %v2976_v1 = vsel %vm761_vm1, %v2973_v63, 0.0 }
 0x8c2   : > { %2977 = vadd.xlane.f32.xlu1 %v2976_v1 }
 0x94f   : > { %v2978_v2 = vpop.xlane.xlu1 %2977 }
 0x950   : > { %v2979_v0 = vmul.f32 0.03125, %v2978_v2 }
 0x952   : > { %v2980_v4 = vsub.f32 %v2973_v63, %v2979_v0 }
 0x954   : > { %v2981_v5 = vmul.f32 %v2980_v4, %v2980_v4 }
 0x956   : > { %v2982_v6 = vsel %vm761_vm1, %v2981_v5, 0.0 }
 0x957   : > { %2983 = vadd.xlane.f32.xlu0 %v2982_v6 }
 0x9e4   : > { %v2984_v7 = vpop.xlane.xlu0 %2983 }
 0x9e5   : > { %v2985_v8 = vmul.f32 0.03125, %v2984_v7 }
 0x9e7   : > { %v2986_v9 = vadd.f32 1e-05, %v2985_v8 }
 0x9e9   : > { %3706 = vrsqrt.f32 %v2986_v9 }
 0x9f3   : > { %v3707_v10 = vpop.eup %3706 }
 0x9f4   : > { %v2988_v12 = vmul.f32 %v3707_v10, %v2980_v4 }
 0x9f6   : > { %v2995_v14 = vmul.f32 %v3192_v60, %v2988_v12 }
 0x9f8   : > { %v3002_v16 = vadd.f32 %v3193_v13, %v2995_v14 }
 0x9fa   : > { %v3010_v11 = vmul.f32 %v3194_v15, %v3002_v16 }
 0x9fc   : > { %v3018_v19 = vadd.f32 %v3195_v17, %v3010_v11 }
 0x9fe   : > { %v3019_v20 = vmul.f32 %v3018_v19, %v4345_v54 }
 0xa00   : > { %3020 = vst.msk [vmem:[%s696_s27] sm:$0xff] %vm761_vm1, %v3019_v20 }
 0xa01   : > { %3721 = shalt.err (!%p3718_p4)
}
 0xa02   : > { %s3722_s23 = scalar_lea.hbm %s4489_s28, 128  ;;  %s3726_s0 = scalar_lea.hbm %s4592_s22, 256 }
 0xa03   : > { %p3723_p7 = scmp.ne.s32.totalorder %s4489_s28, %s3722_s23  ;;  %p3727_p10 = scmp.lt.u32.totalorder %s4489_s28, %s4592_s22 }
 0xa04   : > { %p3728_p11 = scmp.lt.u32.totalorder %s3726_s0, %s3722_s23  ;;  %p3730_p13 = scmp.lt.u32.totalorder %s3722_s23, %s4489_s28 }
 0xa05   : > { %p3724_p8 = pnand %p3723_p7, %p3927_p5 }
 0xa06   : > { %p3729_p12 = por %p3728_p11, %p3727_p10 }
 0xa07   : > { %p3725_p9 = pneg %p3724_p8 }
 0xa08   : > { %p3731_p0 = por %p3730_p13, %p3729_p12 }
 0xa0a   : > { %p3732_p1 = pnand %p3731_p0, %p3725_p9 }
 0xa0c   : > { %3735 = shalt.err (!%p3732_p1)
}
 0xa0d   : > { %3642 = dma.vmem_to_hbm [thread:$0]  (%p3927_p5), %s4491_s9, 128, %s4489_s28, %s3022_s6  }
 0xa0e PF: > { %s4593_s30 = sld [smem:[#allocation7_spill]]  ;;  %s4594_s4 = sld [smem:[#allocation5_spill]] }
 0xa14   : > { %p3648_p2 = scmp.ge.s32.totalorder %s4593_s30, 2  ;;  %s3047_s7 = sand.u32 1, %s4594_s4  }
 0xa15   : > { %s3048_s8 = scalar_lea.sflag [#allocation3], %s3047_s7 }
 0xa16   : > { %p3645_p3 = pnand %p3648_p2, %p3931_p6 }
 0xa18   : > { %3753 = dma.done.wait (!%p3645_p3), %s3048_s8, 128  }
 0xa19   : > { %3755 = vsyncadd (!%p3645_p3), %s3048_s8, 4294967168  ;;  %s4596_s27 = sld [smem:[#allocation8_spill]]  ;;  %s4597_s3 = sld [smem:[#allocation6_spill]] }
 0xa1a   : > { %s4598_s26 = sld [smem:[#allocation9_spill]]  ;;  %s4599_s2 = smov %s3762_s25 }
 0xa1f   : > { %p31_p4 = scmp.ge.s32.totalorder %s4596_s27, 4   ;;  %s4600_s25 = smov %s4597_s3 }
 0xa21   :  { %33 = sbr.rel (!%p31_p4) target bundleno = 15 (0xf), region = 151 }
 0xa28   :  { %3053 = vsyncpa [#allocation3], 1 }
 0xa29   :  { %3055 = vsyncpa [#allocation3 + $0x1], 1 }

</bundles_post_ra>
